<compile_context>
chip_gen: v7x
topology: tpu7x:2x2x1
jax: 0.10.0
libtpu: 0.0.40
codegen_flags: <defaults>
</compile_context>

<pallas_src>
import functools

import jax
import jax.numpy as jnp
from jax import lax
from jax.experimental import pallas as pl
from jax.experimental.pallas import tpu as pltpu

GRID_SIZE = 4        # eKAN grid_size
SPLINE_ORDER = 3     # eKAN spline_order
EDGE_ATTR_DIM = 384  # fixed by the module (nn.Linear(384, out_feat))


# --------------------------------------------------------------------------------------
# Fused per-layer kernel
# --------------------------------------------------------------------------------------
def _fused_layer_kernel(edge_attr_ref, row_ref, col_ref, x_ref,
                        wet_ref, be_ref, wnt_ref, bn_ref,
                        grid_ref, recip_ref, kanw_ref,
                        o_ref, xt_ref, agg_ref, *, spline_order):
    te = edge_attr_ref.shape[0]          # edge tile
    n = x_ref.shape[0]                   # nodes
    n_grid = grid_ref.shape[0]           # grid_size + 2*spline_order + 1

    # ---- first edge tile: node linear + zero the aggregation accumulator -------------
    @pl.when(pl.program_id(0) == 0)
    def _init():
        x_t = (jnp.dot(x_ref[...], wnt_ref[...], preferred_element_type=jnp.float32)
               + bn_ref[...])
        xt_ref[...] = x_t.astype(jnp.bfloat16)        # gather source (bf16 MXU operand)
        agg_ref[...] = jnp.zeros_like(agg_ref)

    # ---- edge linear for this tile: (TE, 384) @ (384, Fp) -----------------------------
    e_t = (jnp.dot(edge_attr_ref[...], wet_ref[...], preferred_element_type=jnp.float32)
           + be_ref[...])

    # ---- gather x_t[row] via bf16 one-hot matmul (f32 accumulation) -------------------
    iota_en = lax.broadcasted_iota(jnp.int32, (te, n), 1)
    onehot_row = (row_ref[...] == iota_en).astype(jnp.float32).astype(jnp.bfloat16)
    gathered = jnp.dot(onehot_row, xt_ref[...], preferred_element_type=jnp.float32)
    msgs = (e_t * gathered).astype(jnp.bfloat16)                       # (TE, Fp)

    # ---- scatter-add over col: one-hot built directly in (N, TE) orientation ----------
    iota_ne = lax.broadcasted_iota(jnp.int32, (n, te), 0)
    onehot_col = (col_ref[...] == iota_ne).astype(jnp.float32).astype(jnp.bfloat16)
    agg_ref[...] += jnp.dot(onehot_col, msgs, preferred_element_type=jnp.float32)

    # ---- last edge tile: KANLinear on the aggregated messages -------------------------
    @pl.when(pl.program_id(0) == pl.num_programs(0) - 1)
    def _finalize():
        a = agg_ref[...]                                               # (N, Fp) f32
        silu = a * (1.0 / (1.0 + jnp.exp(-a)))
        g = [grid_ref[j:j + 1, :] for j in range(n_grid)]
        r = [recip_ref[m:m + 1, :] for m in range(recip_ref.shape[0])]
        # Cox-de Boor recursion; divisions replaced by precomputed reciprocals.
        bases = [jnp.logical_and(a >= g[j], a < g[j + 1]).astype(jnp.float32)
                 for j in range(n_grid - 1)]
        off = 0
        for k in range(1, spline_order + 1):
            nxt = []
            for j in range(n_grid - 1 - k):
                left = (a - g[j]) * r[off + j] * bases[j]
                right = (g[j + k + 1] - a) * r[off + j + 1] * bases[j + 1]
                nxt.append(left + right)
            bases = nxt
            off += n_grid - k
        # One wide MXU dot: [silu | bases_0 .. bases_{G+K-1}] @ combined weight.
        feats = jnp.concatenate([silu] + bases, axis=1)                # (N, (1+G+K)*Fp)
        o_ref[...] = jnp.dot(feats, kanw_ref[...], preferred_element_type=jnp.float32)


def _edge_tile(num_edges):
    # Edge tiles smaller than the full edge count must be multiples of 128 so the
    # (1, TE) col block and (TE, 384) edge block stay layout-aligned.
    for te in (2048, 1024, 512, 256, 128):
        if num_edges % te == 0:
            return te
    return num_edges


def gckan_layer_forward(prep, x, row, col, edge_attr):
    n, f_in = x.shape
    e, ea_dim = edge_attr.shape
    fp = prep["f_pad"]
    te = _edge_tile(e)
    n_grid = prep["grid_t"].shape[0]
    n_recip = prep["recips"].shape[0]
    kan_k = prep["kan_w"].shape[0]

    kern = functools.partial(_fused_layer_kernel, spline_order=SPLINE_ORDER)

    out = pl.pallas_call(
        kern,
        out_shape=jax.ShapeDtypeStruct((n, fp), jnp.float32),
        grid_spec=pltpu.PrefetchScalarGridSpec(
            num_scalar_prefetch=0,
            grid=(e // te,),
            in_specs=[
                pl.BlockSpec((te, ea_dim), lambda i: (i, 0)),    # edge_attr tile
                pl.BlockSpec((te, 1), lambda i: (i, 0)),         # row indices (E,1)
                pl.BlockSpec((1, te), lambda i: (0, i)),         # col indices (1,E)
                pl.BlockSpec((n, f_in), lambda i: (0, 0)),       # x (resident)
                pl.BlockSpec((ea_dim, fp), lambda i: (0, 0)),    # edge W^T (padded)
                pl.BlockSpec((1, fp), lambda i: (0, 0)),         # edge bias
                pl.BlockSpec((f_in, fp), lambda i: (0, 0)),      # node W^T (padded)
                pl.BlockSpec((1, fp), lambda i: (0, 0)),         # node bias
                pl.BlockSpec((n_grid, fp), lambda i: (0, 0)),    # knot rows
                pl.BlockSpec((n_recip, fp), lambda i: (0, 0)),   # reciprocal knot diffs
                pl.BlockSpec((kan_k, fp), lambda i: (0, 0)),     # combined KAN weight
            ],
            out_specs=pl.BlockSpec((n, fp), lambda i: (0, 0)),
            scratch_shapes=[
                pltpu.VMEM((n, fp), jnp.bfloat16),   # x_transformed (gather source)
                pltpu.VMEM((n, fp), jnp.float32),    # aggregated messages accumulator
            ],
        ),
        compiler_params=pltpu.CompilerParams(
            dimension_semantics=("arbitrary",),          # edge axis is a reduction
            vmem_limit_bytes=32 * 1024 * 1024,           # sized for v7x's 64 MiB VMEM
        ),
    )(edge_attr, row, col, x,
      prep["wet"], prep["be"], prep["wnt"], prep["bn"],
      prep["grid_t"], prep["recips"], prep["kan_w"])
    return out[:, :prep["f_out"]]


# --------------------------------------------------------------------------------------
# Parameter init (torch-convention) and one-time prepare (kernel layout)
# --------------------------------------------------------------------------------------
def init_linear(key, in_f, out_f):
    k1, k2 = jax.random.split(key)
    bound = 1.0 / jnp.sqrt(float(in_f))
    return {
        "w": jax.random.uniform(k1, (out_f, in_f), jnp.float32, -bound, bound),
        "b": jax.random.uniform(k2, (out_f,), jnp.float32, -bound, bound),
    }


def init_kan(key, in_f, out_f):
    k1, k2, k3 = jax.random.split(key, 3)
    h = 2.0 / GRID_SIZE  # grid_range = [-1, 1]
    grid_1d = (jnp.arange(-SPLINE_ORDER, GRID_SIZE + SPLINE_ORDER + 1,
                          dtype=jnp.float32) * h) - 1.0
    grid = jnp.tile(grid_1d[None, :], (in_f, 1))  # (in, grid_size + 2*order + 1)
    scale = 1.0 / jnp.sqrt(float(in_f))
    return {
        "grid": grid,
        "base_w": jax.random.uniform(k1, (out_f, in_f), jnp.float32, -scale, scale),
        "spline_w": 0.1 * jax.random.normal(
            k2, (out_f, in_f, GRID_SIZE + SPLINE_ORDER), jnp.float32),
        "spline_scaler": jax.random.uniform(
            k3, (out_f, in_f), jnp.float32, -scale, scale),
    }


def init_gckan_layer(key, in_feat, out_feat):
    k1, k2, k3 = jax.random.split(key, 3)
    return {
        "edge": init_linear(k1, EDGE_ATTR_DIM, out_feat),
        "node": init_linear(k2, in_feat, out_feat),
        "kan": init_kan(k3, out_feat, out_feat),
    }


def init_gkan_nodes(key, mp_layers, num_features, hidden_channels, embedding_dim,
                    skip=True):
    keys = jax.random.split(key, mp_layers)
    convs = []
    for i in range(mp_layers - 1):
        in_features = num_features if i == 0 else hidden_channels
        convs.append(init_gckan_layer(keys[i], in_features, hidden_channels))
    dim_out_mp = (num_features + (mp_layers - 1) * hidden_channels
                  if skip else hidden_channels)
    conv_out = init_gckan_layer(keys[-1], dim_out_mp, embedding_dim)
    return {"convs": convs, "conv_out": conv_out, "skip": skip}


def _prepare_linear(lin, f_pad):
    out_f, in_f = lin["w"].shape
    wt = jnp.zeros((in_f, f_pad), jnp.float32).at[:, :out_f].set(lin["w"].T)
    b = jnp.zeros((1, f_pad), jnp.float32).at[:, :out_f].set(lin["b"][None, :])
    return wt, b


def _prepare_kan(kan, f_pad):
    out_f, in_f = kan["base_w"].shape
    n_coef = GRID_SIZE + SPLINE_ORDER
    gt = kan["grid"].T.astype(jnp.float32)                     # (n_grid, in_f)
    if f_pad > in_f:
        # pad with a valid knot column (grid is uniform) so reciprocals stay finite;
        # padded features carry zero weight and contribute nothing.
        gt = jnp.concatenate([gt, jnp.tile(gt[:, :1], (1, f_pad - in_f))], axis=1)
    recips = jnp.concatenate(
        [1.0 / (gt[k:, :] - gt[:-k, :]) for k in range(1, SPLINE_ORDER + 1)], axis=0)
    scaled = kan["spline_w"] * kan["spline_scaler"][..., None]  # (out, in, G+K)
    blocks = [jnp.zeros((f_pad, f_pad), jnp.float32).at[:in_f, :out_f].set(kan["base_w"].T)]
    for c in range(n_coef):
        blocks.append(jnp.zeros((f_pad, f_pad), jnp.float32)
                      .at[:in_f, :out_f].set(scaled[:, :, c].T))
    kan_w = jnp.concatenate(blocks, axis=0)                     # ((1+G+K)*Fp, Fp)
    return gt, recips, kan_w


def prepare_gckan_layer(p):
    out_f = p["node"]["w"].shape[0]
    f_pad = ((out_f + 127) // 128) * 128
    wet, be = _prepare_linear(p["edge"], f_pad)
    wnt, bn = _prepare_linear(p["node"], f_pad)
    grid_t, recips, kan_w = _prepare_kan(p["kan"], f_pad)
    return {"wet": wet, "be": be, "wnt": wnt, "bn": bn,
            "grid_t": grid_t, "recips": recips, "kan_w": kan_w,
            "f_out": out_f, "f_pad": f_pad}


def prepare_gkan_nodes(params):
    return {"convs": [prepare_gckan_layer(p) for p in params["convs"]],
            "conv_out": prepare_gckan_layer(params["conv_out"]),
            "skip": params["skip"]}


# --------------------------------------------------------------------------------------
# Forward
# --------------------------------------------------------------------------------------
def gkan_nodes_forward(prep, x, edge_index, edge_attr):
    row = edge_index[0].reshape(-1, 1).astype(jnp.int32)
    col = edge_index[1].reshape(1, -1).astype(jnp.int32)
    feats = [x]
    for layer in prep["convs"]:
        x = gckan_layer_forward(layer, x, row, col, edge_attr)
        # dropout(p=0.2) is identity in eval mode
        # TODO(synk): training-mode dropout masking not implemented (inference semantics).
        feats.append(x)
    if prep["skip"]:
        x = jnp.concatenate(feats, axis=1)
    return gckan_layer_forward(prep["conv_out"], x, row, col, edge_attr)


# --------------------------------------------------------------------------------------
# Pure-JAX reference (mirrors the PyTorch module) for a tolerance check
# --------------------------------------------------------------------------------------
def reference_forward(params, x, edge_index, edge_attr):
    def kan_ref(kan, a):
        grid = kan["grid"]                                     # (in, n_grid)
        xk = a[:, :, None]
        bases = ((xk >= grid[:, :-1]) & (xk < grid[:, 1:])).astype(jnp.float32)
        for k in range(1, SPLINE_ORDER + 1):
            bases = ((xk - grid[:, : -(k + 1)])
                     / (grid[:, k:-1] - grid[:, : -(k + 1)]) * bases[:, :, :-1]
                     + (grid[:, k + 1:] - xk)
                     / (grid[:, k + 1:] - grid[:, 1:-k]) * bases[:, :, 1:])
        silu = a * jax.nn.sigmoid(a)
        scaled = kan["spline_w"] * kan["spline_scaler"][..., None]
        return silu @ kan["base_w"].T + jnp.einsum("nic,oic->no", bases, scaled)

    def layer_ref(p, h):
        e_t = edge_attr @ p["edge"]["w"].T + p["edge"]["b"]
        h_t = h @ p["node"]["w"].T + p["node"]["b"]
        msgs = e_t * h_t[edge_index[0]]
        agg = jnp.zeros_like(h_t).at[edge_index[1]].add(msgs)
        return kan_ref(p["kan"], agg)

    feats = [x]
    h = x
    for p in params["convs"]:
        h = layer_ref(p, h)
        feats.append(h)
    if params["skip"]:
        h = jnp.concatenate(feats, axis=1)
    return layer_ref(params["conv_out"], h)


# --------------------------------------------------------------------------------------
if __name__ == "__main__":
    mp_layers = 2
    num_features = 16
    hidden_channels = 32
    embedding_dim = 32
    N, E = 8, 16

    root = jax.random.PRNGKey(0)
    k_param, k_x, k_ei, k_ea = jax.random.split(root, 4)

    params = init_gkan_nodes(k_param, mp_layers, num_features, hidden_channels,
                             embedding_dim, skip=True)
    prep = prepare_gkan_nodes(params)

    x = jax.random.normal(k_x, (N, num_features), jnp.float32)
    edge_index = jax.random.randint(k_ei, (2, E), 0, N, dtype=jnp.int32)
    edge_attr = jax.random.normal(k_ea, (E, EDGE_ATTR_DIM), jnp.float32)

    out = gkan_nodes_forward(prep, x, edge_index, edge_attr)
    jax.block_until_ready(out)
    assert out.shape == (N, embedding_dim) and out.dtype == jnp.float32

    ref = reference_forward(params, x, edge_index, edge_attr)
    rel = float(jnp.linalg.norm(out - ref) / (jnp.linalg.norm(ref) + 1e-12))
    assert rel < 5e-2, f"relative error too high: {rel}"
    print("KERNEL_OK")
</pallas_src>

<mosaic_0001>
module attributes {stable_mosaic.version = 11 : i64} {
  func.func @_fused_layer_kernel(%arg0: i32, %arg1: memref<16x384xf32, #tpu.memory_space<vmem>>, %arg2: memref<16x1xi32, #tpu.memory_space<vmem>>, %arg3: memref<1x16xi32, #tpu.memory_space<vmem>>, %arg4: memref<8x16xf32, #tpu.memory_space<vmem>>, %arg5: memref<384x128xf32, #tpu.memory_space<vmem>>, %arg6: memref<1x128xf32, #tpu.memory_space<vmem>>, %arg7: memref<16x128xf32, #tpu.memory_space<vmem>>, %arg8: memref<1x128xf32, #tpu.memory_space<vmem>>, %arg9: memref<11x128xf32, #tpu.memory_space<vmem>>, %arg10: memref<27x128xf32, #tpu.memory_space<vmem>>, %arg11: memref<1024x128xf32, #tpu.memory_space<vmem>>, %arg12: memref<8x128xf32, #tpu.memory_space<vmem>>, %arg13: memref<8x128xbf16, #tpu.memory_space<vmem>>, %arg14: memref<8x128xf32, #tpu.memory_space<vmem>>) attributes {dimension_semantics = [#tpu.dimension_semantics<arbitrary>], iteration_bounds = array<i64: 1>, scalar_prefetch = 0 : i64, scratch_operands = 2 : i64, tpu.core_type = #tpu.core_type<tc>, window_params = [{transform_indices = @transform_0, window_bounds = array<i64: 16, 384>}, {transform_indices = @transform_1, window_bounds = array<i64: 16, 1>}, {transform_indices = @transform_2, window_bounds = array<i64: 1, 16>}, {pipeline_mode = #tpu.pipeline_mode<synchronous>, transform_indices = @transform_3, window_bounds = array<i64: 8, 16>}, {pipeline_mode = #tpu.pipeline_mode<synchronous>, transform_indices = @transform_4, window_bounds = array<i64: 384, 128>}, {pipeline_mode = #tpu.pipeline_mode<synchronous>, transform_indices = @transform_5, window_bounds = array<i64: 1, 128>}, {pipeline_mode = #tpu.pipeline_mode<synchronous>, transform_indices = @transform_6, window_bounds = array<i64: 16, 128>}, {pipeline_mode = #tpu.pipeline_mode<synchronous>, transform_indices = @transform_7, window_bounds = array<i64: 1, 128>}, {pipeline_mode = #tpu.pipeline_mode<synchronous>, transform_indices = @transform_8, window_bounds = array<i64: 11, 128>}, {pipeline_mode = #tpu.pipeline_mode<synchronous>, transform_indices = @transform_9, window_bounds = array<i64: 27, 128>}, {pipeline_mode = #tpu.pipeline_mode<synchronous>, transform_indices = @transform_10, window_bounds = array<i64: 1024, 128>}, {pipeline_mode = #tpu.pipeline_mode<synchronous>, transform_indices = @transform_11, window_bounds = array<i64: 8, 128>}]} {
    %c0_i32 = arith.constant 0 : i32
    %0 = arith.cmpi eq, %arg0, %c0_i32 : i32
    %1 = arith.extui %0 : i1 to i32
    %c0_i32_0 = arith.constant 0 : i32
    %2 = arith.cmpi ne, %1, %c0_i32_0 : i32
    scf.if %2 {
      %c0_20 = arith.constant 0 : index
      %c0_21 = arith.constant 0 : index
      %34 = vector.load %arg4[%c0_20, %c0_21] : memref<8x16xf32, #tpu.memory_space<vmem>>, vector<8x16xf32>
      %c0_22 = arith.constant 0 : index
      %c0_23 = arith.constant 0 : index
      %35 = vector.load %arg7[%c0_22, %c0_23] : memref<16x128xf32, #tpu.memory_space<vmem>>, vector<16x128xf32>
      %cst_24 = arith.constant dense<0.000000e+00> : vector<8x128xf32>
      %36 = tpu.matmul %34, %35, %cst_24 {dimension_numbers = #tpu.dot_dimension_numbers<[1], [0], [0], [1], [0, 0, 1, 1], [], []>} : vector<8x16xf32>, vector<16x128xf32>, vector<8x128xf32> -> vector<8x128xf32>
      %c0_25 = arith.constant 0 : index
      %c0_26 = arith.constant 0 : index
      %37 = vector.load %arg8[%c0_25, %c0_26] : memref<1x128xf32, #tpu.memory_space<vmem>>, vector<1x128xf32>
      %38 = vector.broadcast %37 : vector<1x128xf32> to vector<8x128xf32>
      %39 = arith.addf %36, %38 : vector<8x128xf32>
      %40 = arith.truncf %39 : vector<8x128xf32> to vector<8x128xbf16>
      %c0_27 = arith.constant 0 : index
      %c0_28 = arith.constant 0 : index
      %41 = vector.load %arg13[%c0_27, %c0_28] : memref<8x128xbf16, #tpu.memory_space<vmem>>, vector<8x128xbf16>
      tpu.vector_store %arg13[%c0_27, %c0_28], %40 {strides = array<i32>} : memref<8x128xbf16, #tpu.memory_space<vmem>>, vector<8x128xbf16>,
      %cst_29 = arith.constant 0.000000e+00 : f32
      %42 = vector.broadcast %cst_29 : f32 to vector<8x128xf32>
      %c0_30 = arith.constant 0 : index
      %c0_31 = arith.constant 0 : index
      %43 = vector.load %arg14[%c0_30, %c0_31] : memref<8x128xf32, #tpu.memory_space<vmem>>, vector<8x128xf32>
      tpu.vector_store %arg14[%c0_30, %c0_31], %42 {strides = array<i32>} : memref<8x128xf32, #tpu.memory_space<vmem>>, vector<8x128xf32>,
    } else {
    }
    %c0 = arith.constant 0 : index
    %c0_1 = arith.constant 0 : index
    %3 = vector.load %arg1[%c0, %c0_1] : memref<16x384xf32, #tpu.memory_space<vmem>>, vector<16x384xf32>
    %c0_2 = arith.constant 0 : index
    %c0_3 = arith.constant 0 : index
    %4 = vector.load %arg5[%c0_2, %c0_3] : memref<384x128xf32, #tpu.memory_space<vmem>>, vector<384x128xf32>
    %cst = arith.constant dense<0.000000e+00> : vector<16x128xf32>
    %5 = tpu.matmul %3, %4, %cst {dimension_numbers = #tpu.dot_dimension_numbers<[1], [0], [0], [1], [0, 0, 1, 1], [], []>} : vector<16x384xf32>, vector<384x128xf32>, vector<16x128xf32> -> vector<16x128xf32>
    %c0_4 = arith.constant 0 : index
    %c0_5 = arith.constant 0 : index
    %6 = vector.load %arg6[%c0_4, %c0_5] : memref<1x128xf32, #tpu.memory_space<vmem>>, vector<1x128xf32>
    %7 = vector.broadcast %6 : vector<1x128xf32> to vector<16x128xf32>
    %8 = arith.addf %5, %7 : vector<16x128xf32>
    %9 = tpu.iota {dimensions = array<i32: 1>} : vector<16x8xi32>
    %c0_6 = arith.constant 0 : index
    %c0_7 = arith.constant 0 : index
    %10 = vector.load %arg2[%c0_6, %c0_7] : memref<16x1xi32, #tpu.memory_space<vmem>>, vector<16x1xi32>
    %11 = vector.broadcast %10 : vector<16x1xi32> to vector<16x8xi32>
    %12 = arith.cmpi eq, %11, %9 : vector<16x8xi32>
    %13 = arith.extui %12 : vector<16x8xi1> to vector<16x8xi32>
    %14 = arith.sitofp %13 : vector<16x8xi32> to vector<16x8xf32>
    %15 = arith.truncf %14 : vector<16x8xf32> to vector<16x8xbf16>
    %c0_8 = arith.constant 0 : index
    %c0_9 = arith.constant 0 : index
    %16 = vector.load %arg13[%c0_8, %c0_9] : memref<8x128xbf16, #tpu.memory_space<vmem>>, vector<8x128xbf16>
    %cst_10 = arith.constant dense<0.000000e+00> : vector<16x128xf32>
    %17 = tpu.matmul %15, %16, %cst_10 {dimension_numbers = #tpu.dot_dimension_numbers<[1], [0], [0], [1], [0, 0, 1, 1], [], []>} : vector<16x8xbf16>, vector<8x128xbf16>, vector<16x128xf32> -> vector<16x128xf32>
    %18 = arith.mulf %8, %17 : vector<16x128xf32>
    %19 = arith.truncf %18 : vector<16x128xf32> to vector<16x128xbf16>
    %20 = tpu.iota {dimensions = array<i32: 0>} : vector<8x16xi32>
    %c0_11 = arith.constant 0 : index
    %c0_12 = arith.constant 0 : index
    %21 = vector.load %arg3[%c0_11, %c0_12] : memref<1x16xi32, #tpu.memory_space<vmem>>, vector<1x16xi32>
    %22 = vector.broadcast %21 : vector<1x16xi32> to vector<8x16xi32>
    %23 = arith.cmpi eq, %22, %20 : vector<8x16xi32>
    %24 = arith.extui %23 : vector<8x16xi1> to vector<8x16xi32>
    %25 = arith.sitofp %24 : vector<8x16xi32> to vector<8x16xf32>
    %26 = arith.truncf %25 : vector<8x16xf32> to vector<8x16xbf16>
    %c0_13 = arith.constant 0 : index
    %c0_14 = arith.constant 0 : index
    %27 = vector.load %arg14[%c0_13, %c0_14] : memref<8x128xf32, #tpu.memory_space<vmem>>, vector<8x128xf32>
    %cst_15 = arith.constant dense<0.000000e+00> : vector<8x128xf32>
    %28 = tpu.matmul %26, %19, %cst_15 {dimension_numbers = #tpu.dot_dimension_numbers<[1], [0], [0], [1], [0, 0, 1, 1], [], []>} : vector<8x16xbf16>, vector<16x128xbf16>, vector<8x128xf32> -> vector<8x128xf32>
    %29 = arith.addf %27, %28 : vector<8x128xf32>
    %c0_16 = arith.constant 0 : index
    %c0_17 = arith.constant 0 : index
    %30 = vector.load %arg14[%c0_16, %c0_17] : memref<8x128xf32, #tpu.memory_space<vmem>>, vector<8x128xf32>
    tpu.vector_store %arg14[%c0_16, %c0_17], %29 {strides = array<i32>} : memref<8x128xf32, #tpu.memory_space<vmem>>, vector<8x128xf32>,
    %c0_i32_18 = arith.constant 0 : i32
    %31 = arith.cmpi eq, %arg0, %c0_i32_18 : i32
    %32 = arith.extui %31 : i1 to i32
    %c0_i32_19 = arith.constant 0 : i32
    %33 = arith.cmpi ne, %32, %c0_i32_19 : i32
    scf.if %33 {
      %c0_20 = arith.constant 0 : index
      %c0_21 = arith.constant 0 : index
      %34 = vector.load %arg14[%c0_20, %c0_21] : memref<8x128xf32, #tpu.memory_space<vmem>>, vector<8x128xf32>
      %cst_22 = arith.constant 0.000000e+00 : f32
      %35 = vector.broadcast %cst_22 : f32 to vector<8x128xf32>
      %36 = arith.subf %35, %34 : vector<8x128xf32>
      %37 = math.exp %36 : vector<8x128xf32>
      %cst_23 = arith.constant 1.000000e+00 : f32
      %38 = vector.broadcast %cst_23 : f32 to vector<8x128xf32>
      %39 = arith.addf %38, %37 : vector<8x128xf32>
      %cst_24 = arith.constant 1.000000e+00 : f32
      %40 = vector.broadcast %cst_24 : f32 to vector<8x128xf32>
      %41 = arith.divf %40, %39 : vector<8x128xf32>
      %42 = arith.mulf %34, %41 : vector<8x128xf32>
      %c0_25 = arith.constant 0 : index
      %c0_26 = arith.constant 0 : index
      %43 = vector.load %arg9[%c0_25, %c0_26] : memref<11x128xf32, #tpu.memory_space<vmem>>, vector<1x128xf32>
      %c1 = arith.constant 1 : index
      %c0_27 = arith.constant 0 : index
      %44 = vector.load %arg9[%c1, %c0_27] : memref<11x128xf32, #tpu.memory_space<vmem>>, vector<1x128xf32>
      %c2 = arith.constant 2 : index
      %c0_28 = arith.constant 0 : index
      %45 = vector.load %arg9[%c2, %c0_28] : memref<11x128xf32, #tpu.memory_space<vmem>>, vector<1x128xf32>
      %c3 = arith.constant 3 : index
      %c0_29 = arith.constant 0 : index
      %46 = vector.load %arg9[%c3, %c0_29] : memref<11x128xf32, #tpu.memory_space<vmem>>, vector<1x128xf32>
      %c4 = arith.constant 4 : index
      %c0_30 = arith.constant 0 : index
      %47 = vector.load %arg9[%c4, %c0_30] : memref<11x128xf32, #tpu.memory_space<vmem>>, vector<1x128xf32>
      %c5 = arith.constant 5 : index
      %c0_31 = arith.constant 0 : index
      %48 = vector.load %arg9[%c5, %c0_31] : memref<11x128xf32, #tpu.memory_space<vmem>>, vector<1x128xf32>
      %c6 = arith.constant 6 : index
      %c0_32 = arith.constant 0 : index
      %49 = vector.load %arg9[%c6, %c0_32] : memref<11x128xf32, #tpu.memory_space<vmem>>, vector<1x128xf32>
      %c7 = arith.constant 7 : index
      %c0_33 = arith.constant 0 : index
      %50 = vector.load %arg9[%c7, %c0_33] : memref<11x128xf32, #tpu.memory_space<vmem>>, vector<1x128xf32>
      %c8 = arith.constant 8 : index
      %c0_34 = arith.constant 0 : index
      %51 = vector.load %arg9[%c8, %c0_34] : memref<11x128xf32, #tpu.memory_space<vmem>>, vector<1x128xf32>
      %c9 = arith.constant 9 : index
      %c0_35 = arith.constant 0 : index
      %52 = vector.load %arg9[%c9, %c0_35] : memref<11x128xf32, #tpu.memory_space<vmem>>, vector<1x128xf32>
      %c10 = arith.constant 10 : index
      %c0_36 = arith.constant 0 : index
      %53 = vector.load %arg9[%c10, %c0_36] : memref<11x128xf32, #tpu.memory_space<vmem>>, vector<1x128xf32>
      %c0_37 = arith.constant 0 : index
      %c0_38 = arith.constant 0 : index
      %54 = vector.load %arg10[%c0_37, %c0_38] : memref<27x128xf32, #tpu.memory_space<vmem>>, vector<1x128xf32>
      %c1_39 = arith.constant 1 : index
      %c0_40 = arith.constant 0 : index
      %55 = vector.load %arg10[%c1_39, %c0_40] : memref<27x128xf32, #tpu.memory_space<vmem>>, vector<1x128xf32>
      %c2_41 = arith.constant 2 : index
      %c0_42 = arith.constant 0 : index
      %56 = vector.load %arg10[%c2_41, %c0_42] : memref<27x128xf32, #tpu.memory_space<vmem>>, vector<1x128xf32>
      %c3_43 = arith.constant 3 : index
      %c0_44 = arith.constant 0 : index
      %57 = vector.load %arg10[%c3_43, %c0_44] : memref<27x128xf32, #tpu.memory_space<vmem>>, vector<1x128xf32>
      %c4_45 = arith.constant 4 : index
      %c0_46 = arith.constant 0 : index
      %58 = vector.load %arg10[%c4_45, %c0_46] : memref<27x128xf32, #tpu.memory_space<vmem>>, vector<1x128xf32>
      %c5_47 = arith.constant 5 : index
      %c0_48 = arith.constant 0 : index
      %59 = vector.load %arg10[%c5_47, %c0_48] : memref<27x128xf32, #tpu.memory_space<vmem>>, vector<1x128xf32>
      %c6_49 = arith.constant 6 : index
      %c0_50 = arith.constant 0 : index
      %60 = vector.load %arg10[%c6_49, %c0_50] : memref<27x128xf32, #tpu.memory_space<vmem>>, vector<1x128xf32>
      %c7_51 = arith.constant 7 : index
      %c0_52 = arith.constant 0 : index
      %61 = vector.load %arg10[%c7_51, %c0_52] : memref<27x128xf32, #tpu.memory_space<vmem>>, vector<1x128xf32>
      %c8_53 = arith.constant 8 : index
      %c0_54 = arith.constant 0 : index
      %62 = vector.load %arg10[%c8_53, %c0_54] : memref<27x128xf32, #tpu.memory_space<vmem>>, vector<1x128xf32>
      %c9_55 = arith.constant 9 : index
      %c0_56 = arith.constant 0 : index
      %63 = vector.load %arg10[%c9_55, %c0_56] : memref<27x128xf32, #tpu.memory_space<vmem>>, vector<1x128xf32>
      %c10_57 = arith.constant 10 : index
      %c0_58 = arith.constant 0 : index
      %64 = vector.load %arg10[%c10_57, %c0_58] : memref<27x128xf32, #tpu.memory_space<vmem>>, vector<1x128xf32>
      %c11 = arith.constant 11 : index
      %c0_59 = arith.constant 0 : index
      %65 = vector.load %arg10[%c11, %c0_59] : memref<27x128xf32, #tpu.memory_space<vmem>>, vector<1x128xf32>
      %c12 = arith.constant 12 : index
      %c0_60 = arith.constant 0 : index
      %66 = vector.load %arg10[%c12, %c0_60] : memref<27x128xf32, #tpu.memory_space<vmem>>, vector<1x128xf32>
      %c13 = arith.constant 13 : index
      %c0_61 = arith.constant 0 : index
      %67 = vector.load %arg10[%c13, %c0_61] : memref<27x128xf32, #tpu.memory_space<vmem>>, vector<1x128xf32>
      %c14 = arith.constant 14 : index
      %c0_62 = arith.constant 0 : index
      %68 = vector.load %arg10[%c14, %c0_62] : memref<27x128xf32, #tpu.memory_space<vmem>>, vector<1x128xf32>
      %c15 = arith.constant 15 : index
      %c0_63 = arith.constant 0 : index
      %69 = vector.load %arg10[%c15, %c0_63] : memref<27x128xf32, #tpu.memory_space<vmem>>, vector<1x128xf32>
      %c16 = arith.constant 16 : index
      %c0_64 = arith.constant 0 : index
      %70 = vector.load %arg10[%c16, %c0_64] : memref<27x128xf32, #tpu.memory_space<vmem>>, vector<1x128xf32>
      %c17 = arith.constant 17 : index
      %c0_65 = arith.constant 0 : index
      %71 = vector.load %arg10[%c17, %c0_65] : memref<27x128xf32, #tpu.memory_space<vmem>>, vector<1x128xf32>
      %c18 = arith.constant 18 : index
      %c0_66 = arith.constant 0 : index
      %72 = vector.load %arg10[%c18, %c0_66] : memref<27x128xf32, #tpu.memory_space<vmem>>, vector<1x128xf32>
      %c19 = arith.constant 19 : index
      %c0_67 = arith.constant 0 : index
      %73 = vector.load %arg10[%c19, %c0_67] : memref<27x128xf32, #tpu.memory_space<vmem>>, vector<1x128xf32>
      %c20 = arith.constant 20 : index
      %c0_68 = arith.constant 0 : index
      %74 = vector.load %arg10[%c20, %c0_68] : memref<27x128xf32, #tpu.memory_space<vmem>>, vector<1x128xf32>
      %c21 = arith.constant 21 : index
      %c0_69 = arith.constant 0 : index
      %75 = vector.load %arg10[%c21, %c0_69] : memref<27x128xf32, #tpu.memory_space<vmem>>, vector<1x128xf32>
      %c22 = arith.constant 22 : index
      %c0_70 = arith.constant 0 : index
      %76 = vector.load %arg10[%c22, %c0_70] : memref<27x128xf32, #tpu.memory_space<vmem>>, vector<1x128xf32>
      %c23 = arith.constant 23 : index
      %c0_71 = arith.constant 0 : index
      %77 = vector.load %arg10[%c23, %c0_71] : memref<27x128xf32, #tpu.memory_space<vmem>>, vector<1x128xf32>
      %c24 = arith.constant 24 : index
      %c0_72 = arith.constant 0 : index
      %78 = vector.load %arg10[%c24, %c0_72] : memref<27x128xf32, #tpu.memory_space<vmem>>, vector<1x128xf32>
      %c25 = arith.constant 25 : index
      %c0_73 = arith.constant 0 : index
      %79 = vector.load %arg10[%c25, %c0_73] : memref<27x128xf32, #tpu.memory_space<vmem>>, vector<1x128xf32>
      %c26 = arith.constant 26 : index
      %c0_74 = arith.constant 0 : index
      %80 = vector.load %arg10[%c26, %c0_74] : memref<27x128xf32, #tpu.memory_space<vmem>>, vector<1x128xf32>
      %81 = vector.broadcast %43 : vector<1x128xf32> to vector<8x128xf32>
      %82 = arith.cmpf oge, %34, %81 : vector<8x128xf32>
      %83 = vector.broadcast %44 : vector<1x128xf32> to vector<8x128xf32>
      %84 = arith.cmpf olt, %34, %83 : vector<8x128xf32>
      %85 = arith.andi %82, %84 : vector<8x128xi1>
      %86 = arith.extui %85 : vector<8x128xi1> to vector<8x128xi32>
      %87 = arith.sitofp %86 : vector<8x128xi32> to vector<8x128xf32>
      %88 = vector.broadcast %44 : vector<1x128xf32> to vector<8x128xf32>
      %89 = arith.cmpf oge, %34, %88 : vector<8x128xf32>
      %90 = vector.broadcast %45 : vector<1x128xf32> to vector<8x128xf32>
      %91 = arith.cmpf olt, %34, %90 : vector<8x128xf32>
      %92 = arith.andi %89, %91 : vector<8x128xi1>
      %93 = arith.extui %92 : vector<8x128xi1> to vector<8x128xi32>
      %94 = arith.sitofp %93 : vector<8x128xi32> to vector<8x128xf32>
      %95 = vector.broadcast %45 : vector<1x128xf32> to vector<8x128xf32>
      %96 = arith.cmpf oge, %34, %95 : vector<8x128xf32>
      %97 = vector.broadcast %46 : vector<1x128xf32> to vector<8x128xf32>
      %98 = arith.cmpf olt, %34, %97 : vector<8x128xf32>
      %99 = arith.andi %96, %98 : vector<8x128xi1>
      %100 = arith.extui %99 : vector<8x128xi1> to vector<8x128xi32>
      %101 = arith.sitofp %100 : vector<8x128xi32> to vector<8x128xf32>
      %102 = vector.broadcast %46 : vector<1x128xf32> to vector<8x128xf32>
      %103 = arith.cmpf oge, %34, %102 : vector<8x128xf32>
      %104 = vector.broadcast %47 : vector<1x128xf32> to vector<8x128xf32>
      %105 = arith.cmpf olt, %34, %104 : vector<8x128xf32>
      %106 = arith.andi %103, %105 : vector<8x128xi1>
      %107 = arith.extui %106 : vector<8x128xi1> to vector<8x128xi32>
      %108 = arith.sitofp %107 : vector<8x128xi32> to vector<8x128xf32>
      %109 = vector.broadcast %47 : vector<1x128xf32> to vector<8x128xf32>
      %110 = arith.cmpf oge, %34, %109 : vector<8x128xf32>
      %111 = vector.broadcast %48 : vector<1x128xf32> to vector<8x128xf32>
      %112 = arith.cmpf olt, %34, %111 : vector<8x128xf32>
      %113 = arith.andi %110, %112 : vector<8x128xi1>
      %114 = arith.extui %113 : vector<8x128xi1> to vector<8x128xi32>
      %115 = arith.sitofp %114 : vector<8x128xi32> to vector<8x128xf32>
      %116 = vector.broadcast %48 : vector<1x128xf32> to vector<8x128xf32>
      %117 = arith.cmpf oge, %34, %116 : vector<8x128xf32>
      %118 = vector.broadcast %49 : vector<1x128xf32> to vector<8x128xf32>
      %119 = arith.cmpf olt, %34, %118 : vector<8x128xf32>
      %120 = arith.andi %117, %119 : vector<8x128xi1>
      %121 = arith.extui %120 : vector<8x128xi1> to vector<8x128xi32>
      %122 = arith.sitofp %121 : vector<8x128xi32> to vector<8x128xf32>
      %123 = vector.broadcast %49 : vector<1x128xf32> to vector<8x128xf32>
      %124 = arith.cmpf oge, %34, %123 : vector<8x128xf32>
      %125 = vector.broadcast %50 : vector<1x128xf32> to vector<8x128xf32>
      %126 = arith.cmpf olt, %34, %125 : vector<8x128xf32>
      %127 = arith.andi %124, %126 : vector<8x128xi1>
      %128 = arith.extui %127 : vector<8x128xi1> to vector<8x128xi32>
      %129 = arith.sitofp %128 : vector<8x128xi32> to vector<8x128xf32>
      %130 = vector.broadcast %50 : vector<1x128xf32> to vector<8x128xf32>
      %131 = arith.cmpf oge, %34, %130 : vector<8x128xf32>
      %132 = vector.broadcast %51 : vector<1x128xf32> to vector<8x128xf32>
      %133 = arith.cmpf olt, %34, %132 : vector<8x128xf32>
      %134 = arith.andi %131, %133 : vector<8x128xi1>
      %135 = arith.extui %134 : vector<8x128xi1> to vector<8x128xi32>
      %136 = arith.sitofp %135 : vector<8x128xi32> to vector<8x128xf32>
      %137 = vector.broadcast %51 : vector<1x128xf32> to vector<8x128xf32>
      %138 = arith.cmpf oge, %34, %137 : vector<8x128xf32>
      %139 = vector.broadcast %52 : vector<1x128xf32> to vector<8x128xf32>
      %140 = arith.cmpf olt, %34, %139 : vector<8x128xf32>
      %141 = arith.andi %138, %140 : vector<8x128xi1>
      %142 = arith.extui %141 : vector<8x128xi1> to vector<8x128xi32>
      %143 = arith.sitofp %142 : vector<8x128xi32> to vector<8x128xf32>
      %144 = vector.broadcast %52 : vector<1x128xf32> to vector<8x128xf32>
      %145 = arith.cmpf oge, %34, %144 : vector<8x128xf32>
      %146 = vector.broadcast %53 : vector<1x128xf32> to vector<8x128xf32>
      %147 = arith.cmpf olt, %34, %146 : vector<8x128xf32>
      %148 = arith.andi %145, %147 : vector<8x128xi1>
      %149 = arith.extui %148 : vector<8x128xi1> to vector<8x128xi32>
      %150 = arith.sitofp %149 : vector<8x128xi32> to vector<8x128xf32>
      %151 = vector.broadcast %43 : vector<1x128xf32> to vector<8x128xf32>
      %152 = arith.subf %34, %151 : vector<8x128xf32>
      %153 = vector.broadcast %54 : vector<1x128xf32> to vector<8x128xf32>
      %154 = arith.mulf %152, %153 : vector<8x128xf32>
      %155 = arith.mulf %154, %87 : vector<8x128xf32>
      %156 = vector.broadcast %45 : vector<1x128xf32> to vector<8x128xf32>
      %157 = arith.subf %156, %34 : vector<8x128xf32>
      %158 = vector.broadcast %55 : vector<1x128xf32> to vector<8x128xf32>
      %159 = arith.mulf %157, %158 : vector<8x128xf32>
      %160 = arith.mulf %159, %94 : vector<8x128xf32>
      %161 = arith.addf %155, %160 : vector<8x128xf32>
      %162 = vector.broadcast %44 : vector<1x128xf32> to vector<8x128xf32>
      %163 = arith.subf %34, %162 : vector<8x128xf32>
      %164 = vector.broadcast %55 : vector<1x128xf32> to vector<8x128xf32>
      %165 = arith.mulf %163, %164 : vector<8x128xf32>
      %166 = arith.mulf %165, %94 : vector<8x128xf32>
      %167 = vector.broadcast %46 : vector<1x128xf32> to vector<8x128xf32>
      %168 = arith.subf %167, %34 : vector<8x128xf32>
      %169 = vector.broadcast %56 : vector<1x128xf32> to vector<8x128xf32>
      %170 = arith.mulf %168, %169 : vector<8x128xf32>
      %171 = arith.mulf %170, %101 : vector<8x128xf32>
      %172 = arith.addf %166, %171 : vector<8x128xf32>
      %173 = vector.broadcast %45 : vector<1x128xf32> to vector<8x128xf32>
      %174 = arith.subf %34, %173 : vector<8x128xf32>
      %175 = vector.broadcast %56 : vector<1x128xf32> to vector<8x128xf32>
      %176 = arith.mulf %174, %175 : vector<8x128xf32>
      %177 = arith.mulf %176, %101 : vector<8x128xf32>
      %178 = vector.broadcast %47 : vector<1x128xf32> to vector<8x128xf32>
      %179 = arith.subf %178, %34 : vector<8x128xf32>
      %180 = vector.broadcast %57 : vector<1x128xf32> to vector<8x128xf32>
      %181 = arith.mulf %179, %180 : vector<8x128xf32>
      %182 = arith.mulf %181, %108 : vector<8x128xf32>
      %183 = arith.addf %177, %182 : vector<8x128xf32>
      %184 = vector.broadcast %46 : vector<1x128xf32> to vector<8x128xf32>
      %185 = arith.subf %34, %184 : vector<8x128xf32>
      %186 = vector.broadcast %57 : vector<1x128xf32> to vector<8x128xf32>
      %187 = arith.mulf %185, %186 : vector<8x128xf32>
      %188 = arith.mulf %187, %108 : vector<8x128xf32>
      %189 = vector.broadcast %48 : vector<1x128xf32> to vector<8x128xf32>
      %190 = arith.subf %189, %34 : vector<8x128xf32>
      %191 = vector.broadcast %58 : vector<1x128xf32> to vector<8x128xf32>
      %192 = arith.mulf %190, %191 : vector<8x128xf32>
      %193 = arith.mulf %192, %115 : vector<8x128xf32>
      %194 = arith.addf %188, %193 : vector<8x128xf32>
      %195 = vector.broadcast %47 : vector<1x128xf32> to vector<8x128xf32>
      %196 = arith.subf %34, %195 : vector<8x128xf32>
      %197 = vector.broadcast %58 : vector<1x128xf32> to vector<8x128xf32>
      %198 = arith.mulf %196, %197 : vector<8x128xf32>
      %199 = arith.mulf %198, %115 : vector<8x128xf32>
      %200 = vector.broadcast %49 : vector<1x128xf32> to vector<8x128xf32>
      %201 = arith.subf %200, %34 : vector<8x128xf32>
      %202 = vector.broadcast %59 : vector<1x128xf32> to vector<8x128xf32>
      %203 = arith.mulf %201, %202 : vector<8x128xf32>
      %204 = arith.mulf %203, %122 : vector<8x128xf32>
      %205 = arith.addf %199, %204 : vector<8x128xf32>
      %206 = vector.broadcast %48 : vector<1x128xf32> to vector<8x128xf32>
      %207 = arith.subf %34, %206 : vector<8x128xf32>
      %208 = vector.broadcast %59 : vector<1x128xf32> to vector<8x128xf32>
      %209 = arith.mulf %207, %208 : vector<8x128xf32>
      %210 = arith.mulf %209, %122 : vector<8x128xf32>
      %211 = vector.broadcast %50 : vector<1x128xf32> to vector<8x128xf32>
      %212 = arith.subf %211, %34 : vector<8x128xf32>
      %213 = vector.broadcast %60 : vector<1x128xf32> to vector<8x128xf32>
      %214 = arith.mulf %212, %213 : vector<8x128xf32>
      %215 = arith.mulf %214, %129 : vector<8x128xf32>
      %216 = arith.addf %210, %215 : vector<8x128xf32>
      %217 = vector.broadcast %49 : vector<1x128xf32> to vector<8x128xf32>
      %218 = arith.subf %34, %217 : vector<8x128xf32>
      %219 = vector.broadcast %60 : vector<1x128xf32> to vector<8x128xf32>
      %220 = arith.mulf %218, %219 : vector<8x128xf32>
      %221 = arith.mulf %220, %129 : vector<8x128xf32>
      %222 = vector.broadcast %51 : vector<1x128xf32> to vector<8x128xf32>
      %223 = arith.subf %222, %34 : vector<8x128xf32>
      %224 = vector.broadcast %61 : vector<1x128xf32> to vector<8x128xf32>
      %225 = arith.mulf %223, %224 : vector<8x128xf32>
      %226 = arith.mulf %225, %136 : vector<8x128xf32>
      %227 = arith.addf %221, %226 : vector<8x128xf32>
      %228 = vector.broadcast %50 : vector<1x128xf32> to vector<8x128xf32>
      %229 = arith.subf %34, %228 : vector<8x128xf32>
      %230 = vector.broadcast %61 : vector<1x128xf32> to vector<8x128xf32>
      %231 = arith.mulf %229, %230 : vector<8x128xf32>
      %232 = arith.mulf %231, %136 : vector<8x128xf32>
      %233 = vector.broadcast %52 : vector<1x128xf32> to vector<8x128xf32>
      %234 = arith.subf %233, %34 : vector<8x128xf32>
      %235 = vector.broadcast %62 : vector<1x128xf32> to vector<8x128xf32>
      %236 = arith.mulf %234, %235 : vector<8x128xf32>
      %237 = arith.mulf %236, %143 : vector<8x128xf32>
      %238 = arith.addf %232, %237 : vector<8x128xf32>
      %239 = vector.broadcast %51 : vector<1x128xf32> to vector<8x128xf32>
      %240 = arith.subf %34, %239 : vector<8x128xf32>
      %241 = vector.broadcast %62 : vector<1x128xf32> to vector<8x128xf32>
      %242 = arith.mulf %240, %241 : vector<8x128xf32>
      %243 = arith.mulf %242, %143 : vector<8x128xf32>
      %244 = vector.broadcast %53 : vector<1x128xf32> to vector<8x128xf32>
      %245 = arith.subf %244, %34 : vector<8x128xf32>
      %246 = vector.broadcast %63 : vector<1x128xf32> to vector<8x128xf32>
      %247 = arith.mulf %245, %246 : vector<8x128xf32>
      %248 = arith.mulf %247, %150 : vector<8x128xf32>
      %249 = arith.addf %243, %248 : vector<8x128xf32>
      %250 = vector.broadcast %43 : vector<1x128xf32> to vector<8x128xf32>
      %251 = arith.subf %34, %250 : vector<8x128xf32>
      %252 = vector.broadcast %64 : vector<1x128xf32> to vector<8x128xf32>
      %253 = arith.mulf %251, %252 : vector<8x128xf32>
      %254 = arith.mulf %253, %161 : vector<8x128xf32>
      %255 = vector.broadcast %46 : vector<1x128xf32> to vector<8x128xf32>
      %256 = arith.subf %255, %34 : vector<8x128xf32>
      %257 = vector.broadcast %65 : vector<1x128xf32> to vector<8x128xf32>
      %258 = arith.mulf %256, %257 : vector<8x128xf32>
      %259 = arith.mulf %258, %172 : vector<8x128xf32>
      %260 = arith.addf %254, %259 : vector<8x128xf32>
      %261 = vector.broadcast %44 : vector<1x128xf32> to vector<8x128xf32>
      %262 = arith.subf %34, %261 : vector<8x128xf32>
      %263 = vector.broadcast %65 : vector<1x128xf32> to vector<8x128xf32>
      %264 = arith.mulf %262, %263 : vector<8x128xf32>
      %265 = arith.mulf %264, %172 : vector<8x128xf32>
      %266 = vector.broadcast %47 : vector<1x128xf32> to vector<8x128xf32>
      %267 = arith.subf %266, %34 : vector<8x128xf32>
      %268 = vector.broadcast %66 : vector<1x128xf32> to vector<8x128xf32>
      %269 = arith.mulf %267, %268 : vector<8x128xf32>
      %270 = arith.mulf %269, %183 : vector<8x128xf32>
      %271 = arith.addf %265, %270 : vector<8x128xf32>
      %272 = vector.broadcast %45 : vector<1x128xf32> to vector<8x128xf32>
      %273 = arith.subf %34, %272 : vector<8x128xf32>
      %274 = vector.broadcast %66 : vector<1x128xf32> to vector<8x128xf32>
      %275 = arith.mulf %273, %274 : vector<8x128xf32>
      %276 = arith.mulf %275, %183 : vector<8x128xf32>
      %277 = vector.broadcast %48 : vector<1x128xf32> to vector<8x128xf32>
      %278 = arith.subf %277, %34 : vector<8x128xf32>
      %279 = vector.broadcast %67 : vector<1x128xf32> to vector<8x128xf32>
      %280 = arith.mulf %278, %279 : vector<8x128xf32>
      %281 = arith.mulf %280, %194 : vector<8x128xf32>
      %282 = arith.addf %276, %281 : vector<8x128xf32>
      %283 = vector.broadcast %46 : vector<1x128xf32> to vector<8x128xf32>
      %284 = arith.subf %34, %283 : vector<8x128xf32>
      %285 = vector.broadcast %67 : vector<1x128xf32> to vector<8x128xf32>
      %286 = arith.mulf %284, %285 : vector<8x128xf32>
      %287 = arith.mulf %286, %194 : vector<8x128xf32>
      %288 = vector.broadcast %49 : vector<1x128xf32> to vector<8x128xf32>
      %289 = arith.subf %288, %34 : vector<8x128xf32>
      %290 = vector.broadcast %68 : vector<1x128xf32> to vector<8x128xf32>
      %291 = arith.mulf %289, %290 : vector<8x128xf32>
      %292 = arith.mulf %291, %205 : vector<8x128xf32>
      %293 = arith.addf %287, %292 : vector<8x128xf32>
      %294 = vector.broadcast %47 : vector<1x128xf32> to vector<8x128xf32>
      %295 = arith.subf %34, %294 : vector<8x128xf32>
      %296 = vector.broadcast %68 : vector<1x128xf32> to vector<8x128xf32>
      %297 = arith.mulf %295, %296 : vector<8x128xf32>
      %298 = arith.mulf %297, %205 : vector<8x128xf32>
      %299 = vector.broadcast %50 : vector<1x128xf32> to vector<8x128xf32>
      %300 = arith.subf %299, %34 : vector<8x128xf32>
      %301 = vector.broadcast %69 : vector<1x128xf32> to vector<8x128xf32>
      %302 = arith.mulf %300, %301 : vector<8x128xf32>
      %303 = arith.mulf %302, %216 : vector<8x128xf32>
      %304 = arith.addf %298, %303 : vector<8x128xf32>
      %305 = vector.broadcast %48 : vector<1x128xf32> to vector<8x128xf32>
      %306 = arith.subf %34, %305 : vector<8x128xf32>
      %307 = vector.broadcast %69 : vector<1x128xf32> to vector<8x128xf32>
      %308 = arith.mulf %306, %307 : vector<8x128xf32>
      %309 = arith.mulf %308, %216 : vector<8x128xf32>
      %310 = vector.broadcast %51 : vector<1x128xf32> to vector<8x128xf32>
      %311 = arith.subf %310, %34 : vector<8x128xf32>
      %312 = vector.broadcast %70 : vector<1x128xf32> to vector<8x128xf32>
      %313 = arith.mulf %311, %312 : vector<8x128xf32>
      %314 = arith.mulf %313, %227 : vector<8x128xf32>
      %315 = arith.addf %309, %314 : vector<8x128xf32>
      %316 = vector.broadcast %49 : vector<1x128xf32> to vector<8x128xf32>
      %317 = arith.subf %34, %316 : vector<8x128xf32>
      %318 = vector.broadcast %70 : vector<1x128xf32> to vector<8x128xf32>
      %319 = arith.mulf %317, %318 : vector<8x128xf32>
      %320 = arith.mulf %319, %227 : vector<8x128xf32>
      %321 = vector.broadcast %52 : vector<1x128xf32> to vector<8x128xf32>
      %322 = arith.subf %321, %34 : vector<8x128xf32>
      %323 = vector.broadcast %71 : vector<1x128xf32> to vector<8x128xf32>
      %324 = arith.mulf %322, %323 : vector<8x128xf32>
      %325 = arith.mulf %324, %238 : vector<8x128xf32>
      %326 = arith.addf %320, %325 : vector<8x128xf32>
      %327 = vector.broadcast %50 : vector<1x128xf32> to vector<8x128xf32>
      %328 = arith.subf %34, %327 : vector<8x128xf32>
      %329 = vector.broadcast %71 : vector<1x128xf32> to vector<8x128xf32>
      %330 = arith.mulf %328, %329 : vector<8x128xf32>
      %331 = arith.mulf %330, %238 : vector<8x128xf32>
      %332 = vector.broadcast %53 : vector<1x128xf32> to vector<8x128xf32>
      %333 = arith.subf %332, %34 : vector<8x128xf32>
      %334 = vector.broadcast %72 : vector<1x128xf32> to vector<8x128xf32>
      %335 = arith.mulf %333, %334 : vector<8x128xf32>
      %336 = arith.mulf %335, %249 : vector<8x128xf32>
      %337 = arith.addf %331, %336 : vector<8x128xf32>
      %338 = vector.broadcast %43 : vector<1x128xf32> to vector<8x128xf32>
      %339 = arith.subf %34, %338 : vector<8x128xf32>
      %340 = vector.broadcast %73 : vector<1x128xf32> to vector<8x128xf32>
      %341 = arith.mulf %339, %340 : vector<8x128xf32>
      %342 = arith.mulf %341, %260 : vector<8x128xf32>
      %343 = vector.broadcast %47 : vector<1x128xf32> to vector<8x128xf32>
      %344 = arith.subf %343, %34 : vector<8x128xf32>
      %345 = vector.broadcast %74 : vector<1x128xf32> to vector<8x128xf32>
      %346 = arith.mulf %344, %345 : vector<8x128xf32>
      %347 = arith.mulf %346, %271 : vector<8x128xf32>
      %348 = arith.addf %342, %347 : vector<8x128xf32>
      %349 = vector.broadcast %44 : vector<1x128xf32> to vector<8x128xf32>
      %350 = arith.subf %34, %349 : vector<8x128xf32>
      %351 = vector.broadcast %74 : vector<1x128xf32> to vector<8x128xf32>
      %352 = arith.mulf %350, %351 : vector<8x128xf32>
      %353 = arith.mulf %352, %271 : vector<8x128xf32>
      %354 = vector.broadcast %48 : vector<1x128xf32> to vector<8x128xf32>
      %355 = arith.subf %354, %34 : vector<8x128xf32>
      %356 = vector.broadcast %75 : vector<1x128xf32> to vector<8x128xf32>
      %357 = arith.mulf %355, %356 : vector<8x128xf32>
      %358 = arith.mulf %357, %282 : vector<8x128xf32>
      %359 = arith.addf %353, %358 : vector<8x128xf32>
      %360 = vector.broadcast %45 : vector<1x128xf32> to vector<8x128xf32>
      %361 = arith.subf %34, %360 : vector<8x128xf32>
      %362 = vector.broadcast %75 : vector<1x128xf32> to vector<8x128xf32>
      %363 = arith.mulf %361, %362 : vector<8x128xf32>
      %364 = arith.mulf %363, %282 : vector<8x128xf32>
      %365 = vector.broadcast %49 : vector<1x128xf32> to vector<8x128xf32>
      %366 = arith.subf %365, %34 : vector<8x128xf32>
      %367 = vector.broadcast %76 : vector<1x128xf32> to vector<8x128xf32>
      %368 = arith.mulf %366, %367 : vector<8x128xf32>
      %369 = arith.mulf %368, %293 : vector<8x128xf32>
      %370 = arith.addf %364, %369 : vector<8x128xf32>
      %371 = vector.broadcast %46 : vector<1x128xf32> to vector<8x128xf32>
      %372 = arith.subf %34, %371 : vector<8x128xf32>
      %373 = vector.broadcast %76 : vector<1x128xf32> to vector<8x128xf32>
      %374 = arith.mulf %372, %373 : vector<8x128xf32>
      %375 = arith.mulf %374, %293 : vector<8x128xf32>
      %376 = vector.broadcast %50 : vector<1x128xf32> to vector<8x128xf32>
      %377 = arith.subf %376, %34 : vector<8x128xf32>
      %378 = vector.broadcast %77 : vector<1x128xf32> to vector<8x128xf32>
      %379 = arith.mulf %377, %378 : vector<8x128xf32>
      %380 = arith.mulf %379, %304 : vector<8x128xf32>
      %381 = arith.addf %375, %380 : vector<8x128xf32>
      %382 = vector.broadcast %47 : vector<1x128xf32> to vector<8x128xf32>
      %383 = arith.subf %34, %382 : vector<8x128xf32>
      %384 = vector.broadcast %77 : vector<1x128xf32> to vector<8x128xf32>
      %385 = arith.mulf %383, %384 : vector<8x128xf32>
      %386 = arith.mulf %385, %304 : vector<8x128xf32>
      %387 = vector.broadcast %51 : vector<1x128xf32> to vector<8x128xf32>
      %388 = arith.subf %387, %34 : vector<8x128xf32>
      %389 = vector.broadcast %78 : vector<1x128xf32> to vector<8x128xf32>
      %390 = arith.mulf %388, %389 : vector<8x128xf32>
      %391 = arith.mulf %390, %315 : vector<8x128xf32>
      %392 = arith.addf %386, %391 : vector<8x128xf32>
      %393 = vector.broadcast %48 : vector<1x128xf32> to vector<8x128xf32>
      %394 = arith.subf %34, %393 : vector<8x128xf32>
      %395 = vector.broadcast %78 : vector<1x128xf32> to vector<8x128xf32>
      %396 = arith.mulf %394, %395 : vector<8x128xf32>
      %397 = arith.mulf %396, %315 : vector<8x128xf32>
      %398 = vector.broadcast %52 : vector<1x128xf32> to vector<8x128xf32>
      %399 = arith.subf %398, %34 : vector<8x128xf32>
      %400 = vector.broadcast %79 : vector<1x128xf32> to vector<8x128xf32>
      %401 = arith.mulf %399, %400 : vector<8x128xf32>
      %402 = arith.mulf %401, %326 : vector<8x128xf32>
      %403 = arith.addf %397, %402 : vector<8x128xf32>
      %404 = vector.broadcast %49 : vector<1x128xf32> to vector<8x128xf32>
      %405 = arith.subf %34, %404 : vector<8x128xf32>
      %406 = vector.broadcast %79 : vector<1x128xf32> to vector<8x128xf32>
      %407 = arith.mulf %405, %406 : vector<8x128xf32>
      %408 = arith.mulf %407, %326 : vector<8x128xf32>
      %409 = vector.broadcast %53 : vector<1x128xf32> to vector<8x128xf32>
      %410 = arith.subf %409, %34 : vector<8x128xf32>
      %411 = vector.broadcast %80 : vector<1x128xf32> to vector<8x128xf32>
      %412 = arith.mulf %410, %411 : vector<8x128xf32>
      %413 = arith.mulf %412, %337 : vector<8x128xf32>
      %414 = arith.addf %408, %413 : vector<8x128xf32>
      %415 = tpu.concatenate %42, %348, %359, %370, %381, %392, %403, %414 in 1 : vector<8x128xf32>, vector<8x128xf32>, vector<8x128xf32>, vector<8x128xf32>, vector<8x128xf32>, vector<8x128xf32>, vector<8x128xf32>, vector<8x128xf32> -> vector<8x1024xf32>
      %c0_75 = arith.constant 0 : index
      %c0_76 = arith.constant 0 : index
      %416 = vector.load %arg11[%c0_75, %c0_76] : memref<1024x128xf32, #tpu.memory_space<vmem>>, vector<1024x128xf32>
      %cst_77 = arith.constant dense<0.000000e+00> : vector<8x128xf32>
      %417 = tpu.matmul %415, %416, %cst_77 {dimension_numbers = #tpu.dot_dimension_numbers<[1], [0], [0], [1], [0, 0, 1, 1], [], []>} : vector<8x1024xf32>, vector<1024x128xf32>, vector<8x128xf32> -> vector<8x128xf32>
      %c0_78 = arith.constant 0 : index
      %c0_79 = arith.constant 0 : index
      %418 = vector.load %arg12[%c0_78, %c0_79] : memref<8x128xf32, #tpu.memory_space<vmem>>, vector<8x128xf32>
      tpu.vector_store %arg12[%c0_78, %c0_79], %417 {strides = array<i32>} : memref<8x128xf32, #tpu.memory_space<vmem>>, vector<8x128xf32>,
    } else {
    }
    return
  }
  func.func @transform_0(%arg0: i32) -> (i32, i32) {
    %c0_i32 = arith.constant 0 : i32
    %c0_i32_0 = arith.constant 0 : i32
    return %arg0, %c0_i32 : i32, i32
  }
  func.func @transform_1(%arg0: i32) -> (i32, i32) {
    %c0_i32 = arith.constant 0 : i32
    %c0_i32_0 = arith.constant 0 : i32
    return %arg0, %c0_i32 : i32, i32
  }
  func.func @transform_2(%arg0: i32) -> (i32, i32) {
    %c0_i32 = arith.constant 0 : i32
    %c0_i32_0 = arith.constant 0 : i32
    return %c0_i32, %arg0 : i32, i32
  }
  func.func @transform_3(%arg0: i32) -> (i32, i32) {
    %c0_i32 = arith.constant 0 : i32
    %c0_i32_0 = arith.constant 0 : i32
    %c0_i32_1 = arith.constant 0 : i32
    return %c0_i32, %c0_i32_0 : i32, i32
  }
  func.func @transform_4(%arg0: i32) -> (i32, i32) {
    %c0_i32 = arith.constant 0 : i32
    %c0_i32_0 = arith.constant 0 : i32
    %c0_i32_1 = arith.constant 0 : i32
    return %c0_i32, %c0_i32_0 : i32, i32
  }
  func.func @transform_5(%arg0: i32) -> (i32, i32) {
    %c0_i32 = arith.constant 0 : i32
    %c0_i32_0 = arith.constant 0 : i32
    %c0_i32_1 = arith.constant 0 : i32
    return %c0_i32, %c0_i32_0 : i32, i32
  }
  func.func @transform_6(%arg0: i32) -> (i32, i32) {
    %c0_i32 = arith.constant 0 : i32
    %c0_i32_0 = arith.constant 0 : i32
    %c0_i32_1 = arith.constant 0 : i32
    return %c0_i32, %c0_i32_0 : i32, i32
  }
  func.func @transform_7(%arg0: i32) -> (i32, i32) {
    %c0_i32 = arith.constant 0 : i32
    %c0_i32_0 = arith.constant 0 : i32
    %c0_i32_1 = arith.constant 0 : i32
    return %c0_i32, %c0_i32_0 : i32, i32
  }
  func.func @transform_8(%arg0: i32) -> (i32, i32) {
    %c0_i32 = arith.constant 0 : i32
    %c0_i32_0 = arith.constant 0 : i32
    %c0_i32_1 = arith.constant 0 : i32
    return %c0_i32, %c0_i32_0 : i32, i32
  }
  func.func @transform_9(%arg0: i32) -> (i32, i32) {
    %c0_i32 = arith.constant 0 : i32
    %c0_i32_0 = arith.constant 0 : i32
    %c0_i32_1 = arith.constant 0 : i32
    return %c0_i32, %c0_i32_0 : i32, i32
  }
  func.func @transform_10(%arg0: i32) -> (i32, i32) {
    %c0_i32 = arith.constant 0 : i32
    %c0_i32_0 = arith.constant 0 : i32
    %c0_i32_1 = arith.constant 0 : i32
    return %c0_i32, %c0_i32_0 : i32, i32
  }
  func.func @transform_11(%arg0: i32) -> (i32, i32) {
    %c0_i32 = arith.constant 0 : i32
    %c0_i32_0 = arith.constant 0 : i32
    %c0_i32_1 = arith.constant 0 : i32
    return %c0_i32, %c0_i32_0 : i32, i32
  }
}

</mosaic_0001>

<bundles_post_ra>
// kernel: tpu_custom_call.1
= control target key start
LH: loop header
LB: loop body
LE: loop exit
PB: predicated region body
PF: predicated region fallthrough
CT: control target
= control target key end

     0   :  { %16 = vsyncpa [#allocation5], 0  ;;  %s2485_s0 = inlined_call_operand.hbm [shape: f32[16,384], index: 0, kind: input, shape index: {}]   ;;  %s2486_s1 = inlined_call_operand.vmem [shape: s32[16,1], index: 1, kind: input, shape index: {}]   ;;  %s2487_s2 = inlined_call_operand.vmem [shape: s32[1,16], index: 2, kind: input, shape index: {}]   ;;  %s2488_s3 = inlined_call_operand.hbm [shape: f32[8,16], index: 3, kind: input, shape index: {}]   ;;  %s2489_s4 = inlined_call_operand.hbm [shape: f32[384,128], index: 4, kind: input, shape index: {}]   ;;  %s2490_s5 = inlined_call_operand.vmem [shape: f32[1,128], index: 5, kind: input, shape index: {}]   ;;  %s2491_s6 = inlined_call_operand.vmem [shape: f32[16,128], index: 6, kind: input, shape index: {}]   ;;  %s2492_s7 = inlined_call_operand.vmem [shape: f32[1,128], index: 7, kind: input, shape index: {}]   ;;  %s2493_s8 = inlined_call_operand.hbm [shape: f32[11,128], index: 8, kind: input, shape index: {}]   ;;  %s2494_s9 = inlined_call_operand.vmem [shape: f32[27,128], index: 9, kind: input, shape index: {}]   ;;  %s2495_s10 = inlined_call_operand.hbm [shape: f32[1024,128], index: 10, kind: input, shape index: {}]   ;;  %s2496_s11 = inlined_call_operand.hbm [shape: f32[8,128], index: 11, kind: output, shape index: {}]  }
   0x1   :  { %17 = vsyncpa [#allocation8], 0 }
   0x2   :  { %18 = vsyncpa [#allocation11], 0 }
   0x3   :  { %19 = vsyncpa [#allocation6], 0  ;;  %s2019_s17 = smov [#allocation7]   ;;  %s1879_s21 = scalar_lea.hbm %s2488_s3, 128 }
   0x4   :  { %s42_s18 = sshll.u32 %s2019_s17, 4  ;;  %p1880_p0 = scmp.ne.s32.totalorder %s2488_s3, %s1879_s21  ;;  %s43_s18 = int_to_ptr.vmem [resolvable:$true] %s42_s18 }
   0x5   :  { %p1883_p1 = scmp.lt.u32.totalorder %s1879_s21, %s2488_s3 }
   0x7   :  { %p1885_p2 = pnand %p1883_p1, %p1880_p0 }
   0x9   :  { %1888 = shalt.err (!%p1885_p2)
}
   0xa   :  { %s1889_s26 = scalar_lea.vmem %s43_s18, 128  ;;  %p1894_p4 = scmp.lt.s32.totalorder %s43_s18, %s43_s18 }
   0xb   :  { %p1890_p3 = scmp.ne.s32.totalorder %s43_s18, %s1889_s26  ;;  %p1895_p5 = scmp.lt.s32.totalorder %s1889_s26, %s1889_s26 }
   0xd   :  { %p1896_p6 = por %p1895_p5, %p1894_p4 }
   0xf   :  { %p1897_p7 = pnand %p1896_p6, %p1890_p3 }
  0x11   :  { %1900 = shalt.err (!%p1897_p7)
}
  0x12   :  { %45 = dma.hbm_to_vmem [thread:$0]  %s2488_s3, 128, %s43_s18, [#allocation8]  }
  0x13   :  { %s2020_s29 = smov [#allocation10]   ;;  %s2021_s12 = smov [#allocation4]  }
  0x14   :  { %s69_s30 = sshll.u32 %s2020_s29, 4  ;;  %s25_s13 = sshll.u32 %s2021_s12, 4  ;;  %s70_s30 = int_to_ptr.vmem [resolvable:$true] %s69_s30  ;;  %s26_s13 = int_to_ptr.vmem [resolvable:$true] %s25_s13 }
  0x15   :  { %s1901_s16 = scalar_lea.hbm %s2493_s8, 256 }
  0x16   :  { %p1902_p8 = scmp.ne.s32.totalorder %s2493_s8, %s1901_s16  ;;  %p1905_p9 = scmp.lt.u32.totalorder %s1901_s16, %s2493_s8 }
  0x18   :  { %p1907_p10 = pnand %p1905_p9, %p1902_p8 }
  0x1a   :  { %1910 = shalt.err (!%p1907_p10)
}
  0x1b   :  { %s1911_s3 = scalar_lea.vmem %s70_s30, 256  ;;  %p1916_p12 = scmp.lt.s32.totalorder %s70_s30, %s70_s30 }
  0x1c   :  { %p1912_p11 = scmp.ne.s32.totalorder %s70_s30, %s1911_s3  ;;  %p1917_p13 = scmp.lt.s32.totalorder %s1911_s3, %s1911_s3 }
  0x1e   :  { %p1918_p0 = por %p1917_p13, %p1916_p12 }
  0x20   :  { %p1919_p1 = pnand %p1918_p0, %p1912_p11 }
  0x22   :  { %1922 = shalt.err (!%p1919_p1)
}
  0x23   :  { %s2022_s18 = smov 128   ;;  %s2023_s22 = smov 8  }
  0x24   :  { %75 = dma.hbm_to_vmem [thread:$0]  %s2493_s8, 256, %s70_s30, [#allocation11], %s2022_s18, %s2022_s18, %s2023_s22  }
  0x25   :  { %s1923_s27 = scalar_lea.hbm %s2485_s0, 768 }
  0x26   :  { %p1924_p2 = scmp.ne.s32.totalorder %s2485_s0, %s1923_s27  ;;  %p1927_p3 = scmp.lt.u32.totalorder %s1923_s27, %s2485_s0 }
  0x28   :  { %p1929_p4 = pnand %p1927_p3, %p1924_p2 }
  0x2a   :  { %1932 = shalt.err (!%p1929_p4)
}
  0x2b   :  { %s1933_s15 = scalar_lea.vmem %s26_s13, 768  ;;  %p1938_p6 = scmp.lt.s32.totalorder %s26_s13, %s26_s13 }
  0x2c   :  { %p1934_p5 = scmp.ne.s32.totalorder %s26_s13, %s1933_s15  ;;  %p1939_p7 = scmp.lt.s32.totalorder %s1933_s15, %s1933_s15 }
  0x2e   :  { %p1940_p8 = por %p1939_p7, %p1938_p6 }
  0x30   :  { %p1941_p9 = pnand %p1940_p8, %p1934_p5 }
  0x32   :  { %1944 = shalt.err (!%p1941_p9)
}
  0x33   :  { %s2024_s8 = smov 384   ;;  %s2025_s30 = smov 24  }
  0x34   :  { %31 = dma.hbm_to_vmem [thread:$0]  %s2485_s0, 768, %s26_s13, [#allocation5], %s2024_s8, %s2024_s8, %s2025_s30  }
  0x35   :  { %s2026_s19 = smov [#allocation9]   ;;  %s2027_s21 = smov [#allocation12]  }
  0x36   :  { %s51_s20 = sshll.u32 %s2026_s19, 4  ;;  %s83_s3 = sshll.u32 %s2027_s21, 4  ;;  %s52_s20 = int_to_ptr.vmem [resolvable:$true] %s51_s20  ;;  %s84_s3 = int_to_ptr.vmem [resolvable:$true] %s83_s3 }
  0x37   :  { %s1945_s25 = scalar_lea.hbm %s2489_s4, 6144 }
  0x38   :  { %p1946_p10 = scmp.ne.s32.totalorder %s2489_s4, %s1945_s25  ;;  %p1949_p11 = scmp.lt.u32.totalorder %s1945_s25, %s2489_s4 }
  0x3a   :  { %p1951_p12 = pnand %p1949_p11, %p1946_p10 }
  0x3c   :  { %1954 = shalt.err (!%p1951_p12)
}
  0x3d   :  { %s1955_s0 = scalar_lea.vmem %s52_s20, 6144  ;;  %p1960_p0 = scmp.lt.s32.totalorder %s52_s20, %s52_s20 }
  0x3e   :  { %p1956_p13 = scmp.ne.s32.totalorder %s52_s20, %s1955_s0  ;;  %p1961_p1 = scmp.lt.s32.totalorder %s1955_s0, %s1955_s0 }
  0x40   :  { %p1962_p2 = por %p1961_p1, %p1960_p0 }
  0x42   :  { %p1963_p3 = pnand %p1962_p2, %p1956_p13 }
  0x44   :  { %1966 = shalt.err (!%p1963_p3)
}
  0x45   :  { %57 = dma.hbm_to_vmem [thread:$0]  %s2489_s4, 6144, %s52_s20, [#allocation8], %s2022_s18, %s2022_s18, %s2023_s22  }
  0x46   :  { %s1967_s8 = scalar_lea.hbm %s2495_s10, 16384 }
  0x47   :  { %p1968_p4 = scmp.ne.s32.totalorder %s2495_s10, %s1967_s8  ;;  %p1971_p5 = scmp.lt.u32.totalorder %s1967_s8, %s2495_s10 }
  0x49   :  { %p1973_p6 = pnand %p1971_p5, %p1968_p4 }
  0x4b   :  { %1976 = shalt.err (!%p1973_p6)
}
  0x4c   :  { %s1977_s21 = scalar_lea.vmem %s84_s3, 16384  ;;  %p1982_p8 = scmp.lt.s32.totalorder %s84_s3, %s84_s3 }
  0x4d   :  { %p1978_p7 = scmp.ne.s32.totalorder %s84_s3, %s1977_s21  ;;  %p1983_p9 = scmp.lt.s32.totalorder %s1977_s21, %s1977_s21 }
  0x4f   :  { %p1984_p10 = por %p1983_p9, %p1982_p8 }
  0x51   :  { %p1985_p11 = pnand %p1984_p10, %p1978_p7 }
  0x53   :  { %1988 = shalt.err (!%p1985_p11)
}
  0x54   :  { %89 = dma.hbm_to_vmem [thread:$0]  %s2495_s10, 16384, %s84_s3, [#allocation11], %s2022_s18, %s2022_s18, %s2023_s22  }
  0x55   :  { %2011 = dma.done.wait [#allocation5], 768  }
  0x56   :  { %2012 = vsyncadd [#allocation5], 4294966528 }
  0x57   :  { %2013 = dma.done.wait [#allocation8], 6272  }
  0x58   :  { %2014 = vsyncadd [#allocation8], 4294961024 }
  0x59   :  { %2015 = dma.done.wait [#allocation11], 16640  }
  0x5a   :  { %2016 = vsyncadd [#allocation11], 4294950656  ;;  %v2028_v0 = vmov 0.0|0.0   ;;  %vm2029_vm0 = vmmov 0   ;;  %v2030_v1 = vmov 0.0   ;;  %v2031_v2 = vmov 0  }
  0x5b   :  { %1665 = vmatprep.subr.bf16.mxu0 %v2028_v0  ;;  %1615 = vmatprep.mubr.msk.f32.mxu0 %vm2029_vm0, %v2030_v1  ;;  %v111_v3 = vld [vmem:[%s2491_s6] sm:$0xff]  ;;  %v112_v4 = vld [vmem:[%s2491_s6 + $0x8] sm:$0xff]  ;;  %v110_v6 = vld [vmem:[#allocation7] sm:$0xff]  ;;  %vm120_vm1 = vcmask 130048   ;;  %vm430_vm4 = vcmask 1043456   ;;  %vm426_vm5 = vcmask 64512  }
  0x5c   :  { %1874 = vset.pattern.permute.xlu0 %v2031_v2  ;;  %v1666_v5 = vpack.c.bf16 %v112_v4, %v111_v3  ;;  %v410_v7 = vld [vmem:[%s2486_s1] sm:$0xff]  ;;  %v411_v8 = vld [vmem:[%s2486_s1 + $0x8] sm:$0xff]  ;;  %v222_v16 = vld [vmem:[#allocation9 + $0x98] sm:$0xff] }
  0x5d   :  { %v219_v9 = vld [vmem:[#allocation9 + $0x80] sm:$0xff]  ;;  %413 = vperm.xlu0 %1874, %v410_v7   ;;  %v220_v10 = vld [vmem:[#allocation9 + $0x88] sm:$0xff]  ;;  %v221_v15 = vld [vmem:[#allocation9 + $0x90] sm:$0xff] }
  0x5e   :  { %v203_v11 = vld [vmem:[#allocation9] sm:$0xff]  ;;  %v204_v12 = vld [vmem:[#allocation9 + $0x8] sm:$0xff]  ;;  %1667 = vmatpush3.bf16.msra.mxu0 %v1666_v5  ;;  %v1668_v13 = vpack.c.bf16 %v220_v10, %v219_v9  ;;  %v205_v17 = vld [vmem:[#allocation9 + $0x10] sm:$0xff]  ;;  %v1672_v18 = vpack.c.bf16 %v222_v16, %v221_v15 }
  0x5f   :  { %v1670_v14 = vpack.c.bf16 %v204_v12, %v203_v11  ;;  %v206_v19 = vld [vmem:[#allocation9 + $0x18] sm:$0xff]  ;;  %v235_v20 = vld [vmem:[#allocation9 + $0x100] sm:$0xff]  ;;  %v236_v21 = vld [vmem:[#allocation9 + $0x108] sm:$0xff] }
  0x60   :  { %1669 = vmatprep.subr.bf16.mxu1 %v1668_v13  ;;  %v1700_v22 = vpack.c.bf16 %v236_v21, %v235_v20  ;;  %v223_v23 = vld [vmem:[#allocation9 + $0xa0] sm:$0xff]  ;;  %v224_v24 = vld [vmem:[#allocation9 + $0xa8] sm:$0xff]  ;;  %v237_v25 = vld [vmem:[#allocation9 + $0x110] sm:$0xff]  ;;  %v1674_v27 = vpack.c.bf16 %v206_v19, %v205_v17 }
  0x61   :  { %1616 = vmatmul.mubr.msk.f32.vlgmr.msra.gmra.mrb[0].mxu0 %vm120_vm1, %v110_v6  ;;  %416 = vperm.xlu0 %1874, %v411_v8   ;;  %v238_v26 = vld [vmem:[#allocation9 + $0x118] sm:$0xff]  ;;  %v207_v28 = vld [vmem:[#allocation9 + $0x20] sm:$0xff]  ;;  %v1676_v30 = vpack.c.bf16 %v224_v24, %v223_v23  ;;  %v208_v31 = vld [vmem:[#allocation9 + $0x28] sm:$0xff] }
  0x62   :  { %1671 = vmatpush3.bf16.msra.mxu1 %v1670_v14  ;;  %1701 = vmatprep.subr.bf16.mxu0 %v1700_v22  ;;  %v1704_v29 = vpack.c.bf16 %v238_v26, %v237_v25  ;;  %v239_v32 = vld [vmem:[#allocation9 + $0x120] sm:$0xff]  ;;  %v240_v33 = vld [vmem:[#allocation9 + $0x128] sm:$0xff]  ;;  %v225_v34 = vld [vmem:[#allocation9 + $0xb0] sm:$0xff]  ;;  %v1678_v39 = vpack.c.bf16 %v208_v31, %v207_v28 }
  0x63   :  { %1673 = vmatprep.subr.bf16.mxu1 %v1672_v18  ;;  %1703 = vmatpush3.bf16.msra.mxu0 %v1700_v22  ;;  %v226_v35 = vld [vmem:[#allocation9 + $0xb8] sm:$0xff]  ;;  %v1708_v36 = vpack.c.bf16 %v240_v33, %v239_v32  ;;  %v241_v37 = vld [vmem:[#allocation9 + $0x130] sm:$0xff]  ;;  %v227_v43 = vld [vmem:[#allocation9 + $0xc0] sm:$0xff] }
  0x64   :  { %1705 = vmatprep.subr.bf16.mxu0 %v1704_v29  ;;  %v242_v38 = vld [vmem:[#allocation9 + $0x138] sm:$0xff]  ;;  %v1680_v40 = vpack.c.bf16 %v226_v35, %v225_v34  ;;  %v209_v41 = vld [vmem:[#allocation9 + $0x30] sm:$0xff]  ;;  %v228_v44 = vld [vmem:[#allocation9 + $0xc8] sm:$0xff] }
  0x65   :  { %v210_v42 = vld [vmem:[#allocation9 + $0x38] sm:$0xff]  ;;  %v1712_v45 = vpack.c.bf16 %v242_v38, %v241_v37  ;;  %v243_v46 = vld [vmem:[#allocation9 + $0x140] sm:$0xff]  ;;  %v244_v47 = vld [vmem:[#allocation9 + $0x148] sm:$0xff]  ;;  %v1684_v49 = vpack.c.bf16 %v228_v44, %v227_v43 }
  0x66   :  { %1675 = vmatpush3.bf16.msra.mxu1 %v1674_v27  ;;  %v1682_v48 = vpack.c.bf16 %v210_v42, %v209_v41  ;;  %v211_v50 = vld [vmem:[#allocation9 + $0x40] sm:$0xff]  ;;  %v212_v51 = vld [vmem:[#allocation9 + $0x48] sm:$0xff]  ;;  %v229_v52 = vld [vmem:[#allocation9 + $0xd0] sm:$0xff]  ;;  %v1716_v54 = vpack.c.bf16 %v244_v47, %v243_v46 }
  0x67   :  { %1677 = vmatprep.subr.bf16.mxu1 %v1676_v30  ;;  %1707 = vmatpush3.bf16.msra.mxu0 %v1704_v29  ;;  %v230_v53 = vld [vmem:[#allocation9 + $0xd8] sm:$0xff]  ;;  %v245_v55 = vld [vmem:[#allocation9 + $0x150] sm:$0xff]  ;;  %v1686_v57 = vpack.c.bf16 %v212_v51, %v211_v50  ;;  %v231_v61 = vld [vmem:[#allocation9 + $0xe0] sm:$0xff]  ;;  %v408_v29 = vlaneseq }
  0x68   :  { %1709 = vmatprep.subr.bf16.mxu0 %v1708_v36  ;;  %v246_v56 = vld [vmem:[#allocation9 + $0x158] sm:$0xff]  ;;  %v1688_v58 = vpack.c.bf16 %v230_v53, %v229_v52  ;;  %v213_v59 = vld [vmem:[#allocation9 + $0x50] sm:$0xff]  ;;  %v232_v62 = vld [vmem:[#allocation9 + $0xe8] sm:$0xff] }
  0x69   :  { %v214_v60 = vld [vmem:[#allocation9 + $0x58] sm:$0xff]  ;;  %v1720_v63 = vpack.c.bf16 %v246_v56, %v245_v55  ;;  %v1692_v2 = vpack.c.bf16 %v232_v62, %v231_v61  ;;  %v215_v3 = vld [vmem:[#allocation9 + $0x60] sm:$0xff]  ;;  %v216_v4 = vld [vmem:[#allocation9 + $0x68] sm:$0xff]  ;;  %v409_v31 = vand.u32 127, %v408_v29 }
  0x6a   :  { %1679 = vmatpush3.bf16.msra.mxu1 %v1678_v39  ;;  %v1690_v0 = vpack.c.bf16 %v214_v60, %v213_v59  ;;  %v1694_v5 = vpack.c.bf16 %v216_v4, %v215_v3  ;;  %v233_v6 = vld [vmem:[#allocation9 + $0xf0] sm:$0xff]  ;;  %v234_v7 = vld [vmem:[#allocation9 + $0xf8] sm:$0xff]  ;;  %v247_v12 = vld [vmem:[#allocation9 + $0x160] sm:$0xff] }
  0x6b   :  { %1681 = vmatprep.subr.bf16.mxu1 %v1680_v40  ;;  %1711 = vmatpush3.bf16.msra.mxu0 %v1708_v36  ;;  %v1696_v8 = vpack.c.bf16 %v234_v7, %v233_v6  ;;  %v217_v9 = vld [vmem:[#allocation9 + $0x70] sm:$0xff]  ;;  %v218_v10 = vld [vmem:[#allocation9 + $0x78] sm:$0xff]  ;;  %v248_v13 = vld [vmem:[#allocation9 + $0x168] sm:$0xff] }
  0x6c   :  { %1713 = vmatprep.subr.bf16.mxu0 %v1712_v45  ;;  %v1698_v11 = vpack.c.bf16 %v218_v10, %v217_v9  ;;  %v1724_v14 = vpack.c.bf16 %v248_v13, %v247_v12  ;;  %v198_v15 = vld [vmem:[#allocation4 + $0x8] sm:$0xff]  ;;  %v197_v16 = vld [vmem:[#allocation4] sm:$0xff]  ;;  %v250_v18 = vld [vmem:[#allocation9 + $0x178] sm:$0xff] }
  0x6d   :  { %322 = vmatprep.mubr.f32.mxu1 %v198_v15  ;;  %v249_v17 = vld [vmem:[#allocation9 + $0x170] sm:$0xff]  ;;  %v201_v19 = vld [vmem:[#allocation4 + $0x20] sm:$0xff]  ;;  %v200_v21 = vld [vmem:[#allocation4 + $0x18] sm:$0xff] }
  0x6e   :  { %1683 = vmatpush3.bf16.msra.mxu1 %v1682_v48  ;;  %v1728_v20 = vpack.c.bf16 %v250_v18, %v249_v17  ;;  %v199_v22 = vld [vmem:[#allocation4 + $0x10] sm:$0xff]  ;;  %v202_v23 = vld [vmem:[#allocation4 + $0x28] sm:$0xff]  ;;  %v1351_v24 = vld [vmem:[%s2492_s7] ss:$0 sm:$0xff] }
  0x6f   :  { %1685 = vmatprep.subr.bf16.mxu1 %v1684_v49  ;;  %1715 = vmatpush3.bf16.msra.mxu0 %v1712_v45  ;;  %v1353_v41 = vld [vmem:[%s2490_s5] ss:$0 sm:$0xff]  ;;  %v941_v51 = vld [vmem:[#allocation12 + $0x80] sm:$0xff]  ;;  %v942_v52 = vld [vmem:[#allocation12 + $0x88] sm:$0xff] }
  0x70   :  { %1717 = vmatprep.subr.bf16.mxu0 %v1716_v54  ;;  %1650 = vmatprep.mubr.f32.mxu0 %v199_v22  ;;  %v1732_v53 = vpack.c.bf16 %v942_v52, %v941_v51  ;;  %v926_v55 = vld [vmem:[#allocation12 + $0x8] sm:$0xff]  ;;  %v973_v62 = vld [vmem:[#allocation12 + $0x180] sm:$0xff]  ;;  %v975_v9 = vld [vmem:[#allocation12 + $0x190] sm:$0xff] }
  0x71   :  { %v957_v6 = vld [vmem:[#allocation12 + $0x100] sm:$0xff]  ;;  %v958_v7 = vld [vmem:[#allocation12 + $0x108] sm:$0xff]  ;;  %v976_v10 = vld [vmem:[#allocation12 + $0x198] sm:$0xff] }
  0x72   :  { %1687 = vmatpush3.bf16.msra.mxu1 %v1686_v57  ;;  %v479_v57 = vshrl.u32 %v408_v29, 7  ;;  %v1766_v12 = vpack.c.bf16 %v958_v7, %v957_v6  ;;  %v1768_v13 = vpack.c.bf16 %v976_v10, %v975_v9  ;;  %v960_v15 = vld [vmem:[#allocation12 + $0x118] sm:$0xff]  ;;  %v978_v17 = vld [vmem:[#allocation12 + $0x1a8] sm:$0xff]  ;;  %v979_v22 = vld [vmem:[#allocation12 + $0x1b0] sm:$0xff] }
  0x73   :  { %1689 = vmatprep.subr.bf16.mxu1 %v1688_v58  ;;  %1719 = vmatpush3.bf16.msra.mxu0 %v1716_v54  ;;  %v925_v54 = vld [vmem:[#allocation12] sm:$0xff]  ;;  %v1357_v58 = vld [vmem:[%s2487_s2] ss:$0 sm:$0xff]  ;;  %v972_v9 = vld [vmem:[#allocation12 + $0x178] sm:$0xff] }
  0x74   :  { %1721 = vmatprep.subr.bf16.mxu0 %v1720_v63  ;;  %v1734_v56 = vpack.c.bf16 %v926_v55, %v925_v54  ;;  %vm485_vm6 = vcmp.eq.s32.totalorder %v1357_v58, %v479_v57  ;;  %v981_v29 = vld [vmem:[#allocation12 + $0x1c0] sm:$0xff]  ;;  %v986_v54 = vld [vmem:[#allocation12 + $0x1e8] sm:$0xff]  ;;  %v947_v55 = vld [vmem:[#allocation12 + $0xb0] sm:$0xff] }
  0x75   :  { %v948_v57 = vld [vmem:[#allocation12 + $0xb8] sm:$0xff]  ;;  %v969_v58 = vld [vmem:[#allocation12 + $0x160] sm:$0xff] }
  0x76   :  { %1691 = vmatpush3.bf16.msra.mxu1 %v1690_v0  ;;  %v933_v10 = vld [vmem:[#allocation12 + $0x40] sm:$0xff] }
  0x77   :  { %1693 = vmatprep.subr.bf16.mxu1 %v1692_v2  ;;  %1723 = vmatpush3.bf16.msra.mxu0 %v1720_v63  ;;  %v974_v63 = vld [vmem:[#allocation12 + $0x188] sm:$0xff]  ;;  %v1358_v2 = vsel %vm485_vm6, 1.0, %v2030_v1 }
  0x78   :  { %1725 = vmatprep.subr.bf16.mxu0 %v1724_v14 }
  0x7a   :  { %1695 = vmatpush3.bf16.msra.mxu1 %v1694_v5  ;;  %v1764_v5 = vpack.c.bf16 %v974_v63, %v973_v62  ;;  %v931_v62 = vld [vmem:[#allocation12 + $0x30] sm:$0xff]  ;;  %v932_v63 = vld [vmem:[#allocation12 + $0x38] sm:$0xff] }
  0x7b   :  { %1697 = vmatprep.subr.bf16.mxu1 %v1696_v8  ;;  %1727 = vmatpush3.bf16.msra.mxu0 %v1724_v14  ;;  %v959_v14 = vld [vmem:[#allocation12 + $0x110] sm:$0xff] }
  0x7c   :  { %1729 = vmatprep.subr.bf16.mxu0 %v1728_v20  ;;  %v1770_v18 = vpack.c.bf16 %v960_v15, %v959_v14  ;;  %v1037_v14 = vld [vmem:[#allocation12 + $0x380] sm:$0xff]  ;;  %v1038_v15 = vld [vmem:[#allocation12 + $0x388] sm:$0xff] }
  0x7e   :  { %1699 = vmatpush3.bf16.msra.mxu1 %v1698_v11  ;;  %v488_v11 = vpack.c.bf16 %v1358_v2, %v1358_v2  ;;  %v1746_v2 = vpack.c.bf16 %v932_v63, %v931_v62  ;;  %v2245_v62 = vld [vmem:[#allocation12 + $0x390] sm:$0xff]  ;;  %v2247_v63 = vld [vmem:[#allocation12 + $0x398] sm:$0xff] }
  0x7f   :  { %1659 = vmatprep.subr.bf16.mxu1 %v2030_v1  ;;  %1731 = vmatpush3.bf16.msra.mxu0 %v1728_v20  ;;  %v961_v20 = vld [vmem:[#allocation12 + $0x120] sm:$0xff] }
  0x80   :  { %1653 = vmatprep.subr.bf16.mxu0 %v2030_v1 }
  0x81   :  { %323 = vmatmul.mubr.f32.vlgmr.msra.gmra.mrb[0].mxu1 %v197_v16  ;;  %v977_v16 = vld [vmem:[#allocation12 + $0x1a0] sm:$0xff] }
  0x82   :  { %327 = vmatprep.mubr.f32.mxu1 %v201_v19  ;;  %1651 = vmatmul.mubr.f32.vlgmr.msra.gmra.mrb[2].mxu0 %v202_v23  ;;  %v1772_v19 = vpack.c.bf16 %v978_v17, %v977_v16  ;;  %v980_v23 = vld [vmem:[#allocation12 + $0x1b8] sm:$0xff]  ;;  %v951_v16 = vld [vmem:[#allocation12 + $0xd0] sm:$0xff]  ;;  %v1828_v17 = vpack.c.bf16 %v1038_v15, %v1037_v14 }
  0x83   :  { %1655 = vmatprep.mubr.msk.bf16.mxu0 %vm2029_vm0, %v2030_v1 }
  0x85   :  { %328 = vmatmul.mubr.f32.gmra.mrb[2].mxu1 %v200_v21  ;;  %v962_v21 = vld [vmem:[#allocation12 + $0x128] sm:$0xff] }
  0x86   :  { %1661 = vmatprep.mubr.msk.bf16.mxu1 %vm2029_vm0, %v2030_v1 }
  0xdc   :  { %v414_v26 = vpop.permute.xlu0 %413 }
  0xdd   :  { %vm418_vm2 = vcmp.eq.s32.totalorder %v414_v26, %v409_v31  ;;  %v963_v26 = vld [vmem:[#allocation12 + $0x130] sm:$0xff] }
  0xde   :  { %v1354_v33 = vsel %vm418_vm2, 1.0, %v2030_v1 }
  0xe0   :  { %v417_v32 = vpop.permute.xlu0 %416 }
  0xe1   :  { %vm419_vm3 = vcmp.eq.s32.totalorder %v417_v32, %v409_v31  ;;  %v943_v32 = vld [vmem:[#allocation12 + $0x90] sm:$0xff] }
  0xe2   :  { %v1355_v34 = vsel %vm419_vm3, 1.0, %v2030_v1 }
  0xe3   :  { %v424_v37 = vpack.c.bf16 %v1355_v34, %v1354_v33  ;;  %v944_v33 = vld [vmem:[#allocation12 + $0x98] sm:$0xff]  ;;  %v965_v34 = vld [vmem:[#allocation12 + $0x140] sm:$0xff] }
 0x134   :  { %v190_v25 = vpop.f32.mrb[0].mxu0 }
 0x135   :  { %v191_v27 = vadd.f32 %v1351_v24, %v190_v25  ;;  %v1617_v28 = vpop.f32.mrb[1].mxu0  ;;  %v1774_v24 = vpack.c.bf16 %v962_v21, %v961_v20  ;;  %v1776_v25 = vpack.c.bf16 %v980_v23, %v979_v22  ;;  %v935_v20 = vld [vmem:[#allocation12 + $0x50] sm:$0xff]  ;;  %v936_v21 = vld [vmem:[#allocation12 + $0x58] sm:$0xff]  ;;  %v953_v23 = vld [vmem:[#allocation12 + $0xe0] sm:$0xff] }
 0x136   :  { %v1754_v22 = vpack.c.bf16 %v936_v21, %v935_v20 }
 0x137   :  { %v194_v30 = vpack.c.bf16 %v191_v27, %v191_v27  ;;  %v964_v27 = vld [vmem:[#allocation12 + $0x138] sm:$0xff] }
 0x138   :  { %v1778_v28 = vpack.c.bf16 %v964_v27, %v963_v26  ;;  %v937_v26 = vld [vmem:[#allocation12 + $0x60] sm:$0xff]  ;;  %v938_v27 = vld [vmem:[#allocation12 + $0x68] sm:$0xff] }
 0x139   :  { %195 = vst [vmem:[#allocation2] sm:$0xf] %v194_v30  ;;  %v982_v30 = vld [vmem:[#allocation12 + $0x1c8] sm:$0xff] }
 0x13a   :  { %v1780_v31 = vpack.c.bf16 %v982_v30, %v981_v29  ;;  %v955_v29 = vld [vmem:[#allocation12 + $0xf0] sm:$0xff]  ;;  %v956_v30 = vld [vmem:[#allocation12 + $0xf8] sm:$0xff] }
 0x140   :  { %v425_v35 = vld [vmem:[#allocation2] sm:$0xf] }
 0x141   :  { %v432_v36 = vsel %vm430_vm4, %v425_v35, 0  ;;  %v1736_v35 = vpack.c.bf16 %v944_v33, %v943_v32  ;;  %v939_v32 = vld [vmem:[#allocation12 + $0x70] sm:$0xff]  ;;  %v940_v33 = vld [vmem:[#allocation12 + $0x78] sm:$0xff] }
 0x142   :  { %1654 = vmatpush3.bf16.msra.mxu0 %v432_v36  ;;  %v966_v36 = vld [vmem:[#allocation12 + $0x148] sm:$0xff] }
 0x143   :  { %1733 = vmatprep.subr.bf16.mxu0 %v1732_v53  ;;  %v985_v53 = vld [vmem:[#allocation12 + $0x1e0] sm:$0xff] }
 0x145   :  { %1656 = vmatmul.mubr.msk.bf16.vlgmr.msra.gmra.mrb[4].mxu0 %vm426_vm5, %v424_v37  ;;  %v927_v37 = vld [vmem:[#allocation12 + $0x10] sm:$0xff] }
 0x146   :  { %1735 = vmatpush3.bf16.msra.mxu0 %v1734_v56  ;;  %v1788_v56 = vpack.c.bf16 %v986_v54, %v985_v53  ;;  %v2231_v53 = vld [vmem:[%s2494_s9 + $0x3] ss:$0 sm:$0xff] }
 0x147   :  { %1737 = vmatprep.subr.bf16.mxu0 %v1736_v35  ;;  %v1005_v35 = vld [vmem:[#allocation12 + $0x280] sm:$0xff] }
 0x154   :  { %v1443_v38 = vpop.f32.mrb[0].mxu1 }
 0x155   :  { %v1444_v39 = vpop.f32.mrb[1].mxu1  ;;  %v1652_v46 = vpop.f32.mrb[2].mxu0 }
 0x156   :  { %v1445_v40 = vadd.f32 %v1444_v39, %v1443_v38  ;;  %v399_v48 = vpop.f32.mrb[3].mxu0  ;;  %v928_v38 = vld [vmem:[#allocation12 + $0x18] sm:$0xff]  ;;  %v1782_v39 = vpack.c.bf16 %v966_v36, %v965_v34  ;;  %v1762_v34 = vpack.c.bf16 %v940_v33, %v939_v32  ;;  %v1006_v36 = vld [vmem:[#allocation12 + $0x288] sm:$0xff] }
 0x158   :  { %v1446_v42 = vpop.f32.mrb[2].mxu1  ;;  %v325_v44 = vadd.f32 %v1445_v40, %v1353_v41  ;;  %v1738_v40 = vpack.c.bf16 %v928_v38, %v927_v37  ;;  %v1796_v37 = vpack.c.bf16 %v1006_v36, %v1005_v35  ;;  %v2196_v38 = vld [vmem:[#allocation12 + $0x300] sm:$0xff]  ;;  %v1385_v36 = vld [vmem:[%s2494_s9 + $0x4] ss:$0 sm:$0xff] }
 0x159   :  { %v1447_v43 = vpop.f32.mrb[3].mxu1 }
 0x15a   :  { %v1448_v45 = vadd.f32 %v1447_v43, %v1446_v42  ;;  %v400_v49 = vadd.f32 %v399_v48, %v325_v44  ;;  %v984_v42 = vld [vmem:[#allocation12 + $0x1d8] sm:$0xff]  ;;  %1739 = vmatpush3.bf16.msra.mxu0 %v1738_v40  ;;  %v945_v44 = vld [vmem:[#allocation12 + $0xa0] sm:$0xff]  ;;  %v1360_v40 = vld [vmem:[#allocation10] ss:$0 sm:$0xff] }
 0x15b   :  { %v968_v48 = vld [vmem:[#allocation12 + $0x158] sm:$0xff] }
 0x15c   :  { %v330_v47 = vadd.f32 %v1448_v45, %v1353_v41  ;;  %v983_v41 = vld [vmem:[#allocation12 + $0x1d0] sm:$0xff]  ;;  %v946_v45 = vld [vmem:[#allocation12 + $0xa8] sm:$0xff] }
 0x15d   :  { %v1784_v43 = vpack.c.bf16 %v984_v42, %v983_v41  ;;  %v1361_v41 = vld [vmem:[#allocation10 + $0x1] ss:$0 sm:$0xff]  ;;  %v1363_v42 = vld [vmem:[#allocation10 + $0x2] ss:$0 sm:$0xff] }
 0x15e   :  { %v405_v50 = vadd.f32 %v1652_v46, %v330_v47  ;;  %v967_v46 = vld [vmem:[#allocation12 + $0x150] sm:$0xff]  ;;  %v1740_v47 = vpack.c.bf16 %v946_v45, %v945_v44 }
 0x15f   :  { %v1786_v51 = vpack.c.bf16 %v968_v48, %v967_v46  ;;  %v2202_v44 = vld [vmem:[#allocation10 + $0x4] ss:$0 sm:$0xff] }
 0x160   :  { %1741 = vmatprep.subr.bf16.mxu0 %v1740_v47 }
 0x218   :  { %v468_v59 = vpop.f32.mrb[4].mxu0 }
 0x219   :  { %v475_v60 = vmul.f32 %v468_v59, %v400_v49  ;;  %v1657_v61 = vpop.f32.mrb[5].mxu0  ;;  %v929_v49 = vld [vmem:[#allocation12 + $0x20] sm:$0xff]  ;;  %v970_v59 = vld [vmem:[#allocation12 + $0x168] sm:$0xff] }
 0x21a   :  { %v471_v0 = vpop.f32.mrb[6].mxu0  ;;  %v1790_v61 = vpack.c.bf16 %v970_v59, %v969_v58 }
 0x21b   :  { %v476_v3 = vmul.f32 %v471_v0, %v405_v50  ;;  %v1658_v4 = vpop.f32.mrb[7].mxu0  ;;  %v930_v50 = vld [vmem:[#allocation12 + $0x28] sm:$0xff]  ;;  %v987_v0 = vld [vmem:[#allocation12 + $0x1f0] sm:$0xff] }
 0x21c   :  { %v1742_v52 = vpack.c.bf16 %v930_v50, %v929_v49  ;;  %v949_v4 = vld [vmem:[#allocation12 + $0xc0] sm:$0xff]  ;;  %v1381_v49 = vld [vmem:[%s2494_s9] ss:$0 sm:$0xff]  ;;  %v1382_v50 = vld [vmem:[%s2494_s9 + $0x1] ss:$0 sm:$0xff] }
 0x21d   :  { %v477_v8 = vpack.c.bf16 %v476_v3, %v475_v60  ;;  %v1744_v60 = vpack.c.bf16 %v948_v57, %v947_v55  ;;  %v988_v3 = vld [vmem:[#allocation12 + $0x1f8] sm:$0xff] }
 0x21e   :  { %1743 = vmatpush3.bf16.msra.mxu0 %v1742_v52  ;;  %v1792_v6 = vpack.c.bf16 %v988_v3, %v987_v0  ;;  %v1383_v52 = vld [vmem:[%s2494_s9 + $0x2] ss:$0 sm:$0xff]  ;;  %v1391_v0 = vld [vmem:[%s2494_s9 + $0xa] ss:$0 sm:$0xff] }
 0x21f   :  { %1660 = vmatpush3.bf16.msra.mxu1 %v477_v8  ;;  %1745 = vmatprep.subr.bf16.mxu0 %v1744_v60  ;;  %v971_v8 = vld [vmem:[#allocation12 + $0x170] sm:$0xff] }
 0x220   :  { %1765 = vmatprep.subr.bf16.mxu1 %v1764_v5  ;;  %v950_v5 = vld [vmem:[#allocation12 + $0xc8] sm:$0xff] }
 0x221   :  { %v1748_v7 = vpack.c.bf16 %v950_v5, %v949_v4 }
 0x222   :  { %1662 = vmatmul.mubr.msk.bf16.vlgmr.msra.gmra.mrb[4].mxu1 %vm120_vm1, %v488_v11  ;;  %v934_v11 = vld [vmem:[#allocation12 + $0x48] sm:$0xff]  ;;  %1747 = vmatpush3.bf16.msra.mxu0 %v1746_v2 }
 0x223   :  { %1767 = vmatpush3.bf16.msra.mxu1 %v1766_v12  ;;  %v1794_v12 = vpack.c.bf16 %v972_v9, %v971_v8  ;;  %1749 = vmatprep.subr.bf16.mxu0 %v1748_v7  ;;  %v1393_v7 = vld [vmem:[%s2494_s9 + $0xc] ss:$0 sm:$0xff] }
 0x224   :  { %1769 = vmatprep.subr.bf16.mxu1 %v1768_v13  ;;  %v1750_v13 = vpack.c.bf16 %v934_v11, %v933_v10 }
 0x226   :  { %1751 = vmatpush3.bf16.msra.mxu0 %v1750_v13  ;;  %v1401_v13 = vld [vmem:[%s2494_s9 + $0x14] ss:$0 sm:$0xff] }
 0x227   :  { %1771 = vmatpush3.bf16.msra.mxu1 %v1770_v18  ;;  %v952_v18 = vld [vmem:[#allocation12 + $0xd8] sm:$0xff] }
 0x228   :  { %1773 = vmatprep.subr.bf16.mxu1 %v1772_v19  ;;  %v1752_v19 = vpack.c.bf16 %v952_v18, %v951_v16 }
 0x22a   :  { %1753 = vmatprep.subr.bf16.mxu0 %v1752_v19 }
 0x22b   :  { %1775 = vmatpush3.bf16.msra.mxu1 %v1774_v24  ;;  %1755 = vmatpush3.bf16.msra.mxu0 %v1754_v22  ;;  %v954_v24 = vld [vmem:[#allocation12 + $0xe8] sm:$0xff]  ;;  %v2276_v22 = vld [vmem:[#allocation10 + $0x5] ss:$0 sm:$0xff] }
 0x22c   :  { %1777 = vmatprep.subr.bf16.mxu1 %v1776_v25  ;;  %v1756_v25 = vpack.c.bf16 %v954_v24, %v953_v23 }
 0x22e   :  { %1757 = vmatprep.subr.bf16.mxu0 %v1756_v25 }
 0x22f   :  { %1779 = vmatpush3.bf16.msra.mxu1 %v1778_v28  ;;  %v1758_v28 = vpack.c.bf16 %v938_v27, %v937_v26  ;;  %v2278_v27 = vld [vmem:[#allocation10 + $0x6] ss:$0 sm:$0xff] }
 0x230   :  { %1781 = vmatprep.subr.bf16.mxu1 %v1780_v31  ;;  %v1760_v31 = vpack.c.bf16 %v956_v30, %v955_v29 }
 0x231   :  { %1759 = vmatpush3.bf16.msra.mxu0 %v1758_v28 }
 0x232   :  { %1761 = vmatprep.subr.bf16.mxu0 %v1760_v31 }
 0x233   :  { %1783 = vmatpush3.bf16.msra.mxu1 %v1782_v39  ;;  %v2198_v39 = vld [vmem:[#allocation12 + $0x308] sm:$0xff] }
 0x234   :  { %1785 = vmatprep.subr.bf16.mxu1 %v1784_v43  ;;  %v2200_v43 = vld [vmem:[#allocation10 + $0x3] ss:$0 sm:$0xff]  ;;  %v1830_v46 = vpack.c.bf16 %v2198_v39, %v2196_v38 }
 0x235   :  { %1763 = vmatpush3.bf16.msra.mxu0 %v1762_v34 }
 0x236   :  { %1797 = vmatprep.subr.bf16.mxu0 %v1796_v37 }
 0x237   :  { %1787 = vmatpush3.bf16.msra.mxu1 %v1786_v51 }
 0x238   :  { %1789 = vmatprep.subr.bf16.mxu1 %v1788_v56 }
 0x23b   :  { %1791 = vmatpush3.bf16.msra.mxu1 %v1790_v61 }
 0x23c   :  { %1793 = vmatprep.subr.bf16.mxu1 %v1792_v6  ;;  %v1392_v6 = vld [vmem:[%s2494_s9 + $0xb] ss:$0 sm:$0xff] }
 0x23f   :  { %1795 = vmatpush3.bf16.msra.mxu1 %v1794_v12  ;;  %v1400_v12 = vld [vmem:[%s2494_s9 + $0x13] ss:$0 sm:$0xff] }
 0x240   :  { %1829 = vmatprep.subr.bf16.mxu1 %v1828_v17  ;;  %v1832_v17 = vpack.c.bf16 %v2247_v63, %v2245_v62 }
 0x2f5   :  { %v2204_v45 = vpop.f32.mrb[4].mxu1 }
 0x2f6   :  { %v1663_v47 = vpop.f32.mrb[5].mxu1  ;;  %vm589_vm7 = vcmp.ge.f32.partialorder %v2204_v45, %v1360_v40  ;;  %vm594_vm8 = vcmp.lt.f32.partialorder %v2204_v45, %v1361_v41  ;;  %vm598_vm9 = vcmp.ge.f32.partialorder %v2204_v45, %v1361_v41  ;;  %vm603_vm10 = vcmp.lt.f32.partialorder %v2204_v45, %v1363_v42 }
 0x2f7   :  { %v531_v48 = vpop.f32.mrb[6].mxu1  ;;  %vm595_vm11 = vmand %vm589_vm7, %vm594_vm8  ;;  %vm607_vm12 = vcmp.ge.f32.partialorder %v2204_v45, %v1363_v42  ;;  %vm612_vm13 = vcmp.lt.f32.partialorder %v2204_v45, %v2200_v43  ;;  %vm616_vm14 = vcmp.ge.f32.partialorder %v2204_v45, %v2200_v43  ;;  %vm621_vm15 = vcmp.lt.f32.partialorder %v2204_v45, %v2202_v44 }
 0x2f8   :  { %v1664_v51 = vpop.f32.mrb[7].mxu1  ;;  %v1362_v54 = vsel %vm595_vm11, 1.0, %v2030_v1  ;;  %vm604_vm0 = vmand %vm598_vm9, %vm603_vm10  ;;  %v679_v55 = vsub.f32 %v2204_v45, %v1360_v40  ;;  %v686_v56 = vsub.f32 %v1363_v42, %v2204_v45  ;;  %v694_v57 = vsub.f32 %v2204_v45, %v1361_v41  ;;  %v2294_v40 = vld [vmem:[%s2494_s9 + $0x5] ss:$0 sm:$0xff] }
 0x2f9   :  { %v1364_v58 = vsel %vm604_vm0, 1.0, %v2030_v1  ;;  %vm613_vm1 = vmand %vm607_vm12, %vm612_vm13  ;;  %v697_v59 = vsub.f32 %v2200_v43, %v2204_v45  ;;  %v2241_v60 = vsub.f32 %v2204_v45, %v1363_v42  ;;  %v708_v61 = vsub.f32 %v2202_v44, %v2204_v45 }
 0x2fa   :  { %v1366_v2 = vsel %vm613_vm1, 1.0, %v2030_v1  ;;  %vm622_vm2 = vmand %vm616_vm14, %vm621_vm15  ;;  %v684_v3 = vmul.f32 %v1381_v49, %v679_v55  ;;  %v691_v4 = vmul.f32 %v1382_v50, %v686_v56  ;;  %v695_v5 = vmul.f32 %v1382_v50, %v694_v57  ;;  %v1394_v50 = vld [vmem:[%s2494_s9 + $0xd] ss:$0 sm:$0xff] }
 0x2fb   :  { %v1368_v8 = vsel %vm622_vm2, 1.0, %v2030_v1  ;;  %v702_v9 = vmul.f32 %v1383_v52, %v697_v59  ;;  %v706_v10 = vmul.f32 %v1383_v52, %v2241_v60  ;;  %v713_v11 = vmul.f32 %v2231_v53, %v708_v61 }
 0x2fc   :  { %v685_v14 = vmul.f32 %v1362_v54, %v684_v3  ;;  %v692_v15 = vmul.f32 %v1364_v58, %v691_v4  ;;  %v696_v16 = vmul.f32 %v1364_v58, %v695_v5  ;;  %v786_v21 = vmul.f32 %v1391_v0, %v679_v55  ;;  %v2318_v58 = vld [vmem:[%s2494_s9 + $0xe] ss:$0 sm:$0xff] }
 0x2fd   :  { %v703_v18 = vmul.f32 %v1366_v2, %v702_v9  ;;  %v707_v19 = vmul.f32 %v1366_v2, %v706_v10  ;;  %v714_v20 = vmul.f32 %v1368_v8, %v713_v11  ;;  %v792_v24 = vmul.f32 %v1392_v6, %v697_v59  ;;  %v1402_v59 = vld [vmem:[%s2494_s9 + $0x15] ss:$0 sm:$0xff] }
 0x2fe   :  { %v693_v23 = vadd.f32 %v692_v15, %v685_v14  ;;  %v795_v25 = vmul.f32 %v1392_v6, %v694_v57  ;;  %v801_v26 = vmul.f32 %v1393_v7, %v708_v61  ;;  %v862_v30 = vmul.f32 %v1400_v12, %v679_v55  ;;  %v2329_v12 = vld [vmem:[#allocation10 + $0x7] ss:$0 sm:$0xff] }
 0x2ff   :  { %v704_v28 = vadd.f32 %v703_v18, %v696_v16  ;;  %v715_v29 = vadd.f32 %v714_v20, %v707_v19  ;;  %v868_v31 = vmul.f32 %v1401_v13, %v708_v61  ;;  %vm625_vm3 = vcmp.ge.f32.partialorder %v2204_v45, %v2202_v44  ;;  %v1375_v16 = vld [vmem:[#allocation10 + $0x8] ss:$0 sm:$0xff]  ;;  %v1377_v18 = vld [vmem:[#allocation10 + $0x9] ss:$0 sm:$0xff] }
 0x300   :  { %v787_v32 = vmul.f32 %v786_v21, %v693_v23  ;;  %vm630_vm4 = vcmp.lt.f32.partialorder %v2204_v45, %v2276_v22  ;;  %vm634_vm5 = vcmp.ge.f32.partialorder %v2204_v45, %v2276_v22  ;;  %vm639_vm7 = vcmp.lt.f32.partialorder %v2204_v45, %v2278_v27  ;;  %v1379_v21 = vld [vmem:[#allocation10 + $0xa] ss:$0 sm:$0xff] }
 0x301   :  { %v793_v33 = vmul.f32 %v792_v24, %v704_v28  ;;  %v796_v34 = vmul.f32 %v795_v25, %v704_v28  ;;  %v802_v35 = vmul.f32 %v801_v26, %v715_v29  ;;  %vm631_vm6 = vmand %vm625_vm3, %vm630_vm4  ;;  %v871_v37 = vmul.f32 %v1401_v13, %v694_v57  ;;  %v2350_v28 = vld [vmem:[%s2494_s9 + $0x6] ss:$0 sm:$0xff] }
 0x302   :  { %vm640_vm8 = vmand %vm634_vm5, %vm639_vm7  ;;  %v716_v41 = vsub.f32 %v2204_v45, %v2200_v43  ;;  %v719_v42 = vsub.f32 %v2276_v22, %v2204_v45  ;;  %v2302_v47 = vsub.f32 %v2204_v45, %v2202_v44  ;;  %v1370_v51 = vsel %vm631_vm6, 1.0, %v2030_v1 }
 0x303   :  { %v794_v48 = vadd.f32 %v793_v33, %v787_v32  ;;  %v803_v49 = vadd.f32 %v802_v35, %v796_v34  ;;  %v730_v52 = vsub.f32 %v2278_v27, %v2204_v45  ;;  %v2311_v43 = vsel %vm640_vm8, 1.0, %v2030_v1 }
 0x304   :  { %v717_v54 = vmul.f32 %v2231_v53, %v716_v41  ;;  %v724_v55 = vmul.f32 %v1385_v36, %v719_v42  ;;  %v728_v44 = vmul.f32 %v1385_v36, %v2302_v47  ;;  %v804_v0 = vmul.f32 %v1393_v7, %v2241_v60  ;;  %v1403_v53 = vld [vmem:[%s2494_s9 + $0x16] ss:$0 sm:$0xff] }
 0x305   :  { %v863_v56 = vmul.f32 %v862_v30, %v794_v48  ;;  %v869_v57 = vmul.f32 %v868_v31, %v803_v49  ;;  %v735_v61 = vmul.f32 %v2294_v40, %v730_v52  ;;  %v810_v5 = vmul.f32 %v1394_v50, %v719_v42 }
 0x306   :  { %v718_v2 = vmul.f32 %v1368_v8, %v717_v54  ;;  %v725_v3 = vmul.f32 %v1370_v51, %v724_v55  ;;  %v729_v4 = vmul.f32 %v1370_v51, %v728_v44  ;;  %v805_v10 = vmul.f32 %v804_v0, %v715_v29  ;;  %v1388_v29 = vld [vmem:[%s2494_s9 + $0x7] ss:$0 sm:$0xff]  ;;  %v2390_v54 = vld [vmem:[%s2494_s9 + $0x10] ss:$0 sm:$0xff] }
 0x307   :  { %v870_v6 = vadd.f32 %v869_v57, %v863_v56  ;;  %v736_v9 = vmul.f32 %v2311_v43, %v735_v61  ;;  %v813_v11 = vmul.f32 %v1394_v50, %v716_v41  ;;  %v819_v14 = vmul.f32 %v2318_v58, %v730_v52  ;;  %v1023_v57 = vld [vmem:[#allocation12 + $0x310] sm:$0xff] }
 0x308   :  { %v726_v13 = vadd.f32 %v725_v3, %v718_v2  ;;  %v877_v15 = vmul.f32 %v1402_v59, %v719_v42  ;;  %v880_v7 = vmul.f32 %v1402_v59, %v2241_v60  ;;  %v886_v19 = vmul.f32 %v1403_v53, %v730_v52  ;;  %v1389_v42 = vld [vmem:[%s2494_s9 + $0x8] ss:$0 sm:$0xff]  ;;  %v1390_v52 = vld [vmem:[%s2494_s9 + $0x9] ss:$0 sm:$0xff]  ;;  %v1041_v3 = vld [vmem:[#allocation12 + $0x3a0] sm:$0xff] }
 0x309   :  { %1117 = vmatprep.mubr.f32.mxu0 %v870_v6  ;;  %v2333_v8 = vadd.f32 %v736_v9, %v729_v4  ;;  %v2335_v20 = vmul.f32 %v1403_v53, %v716_v41  ;;  %vm643_vm9 = vcmp.ge.f32.partialorder %v2204_v45, %v2278_v27  ;;  %vm648_vm10 = vcmp.lt.f32.partialorder %v2204_v45, %v2329_v12  ;;  %v1024_v2 = vld [vmem:[#allocation12 + $0x318] sm:$0xff]  ;;  %v1042_v4 = vld [vmem:[#allocation12 + $0x3a8] sm:$0xff] }
 0x30a   :  { %v811_v23 = vmul.f32 %v810_v5, %v726_v13  ;;  %v814_v24 = vmul.f32 %v813_v11, %v726_v13  ;;  %vm652_vm11 = vcmp.ge.f32.partialorder %v2204_v45, %v2329_v12  ;;  %vm649_vm12 = vmand %vm643_vm9, %vm648_vm10  ;;  %vm657_vm13 = vcmp.lt.f32.partialorder %v2204_v45, %v1375_v16  ;;  %v1398_v5 = vld [vmem:[%s2494_s9 + $0x11] ss:$0 sm:$0xff] }
 0x30b   :  { %v820_v60 = vmul.f32 %v819_v14, %v2333_v8  ;;  %vm661_vm14 = vcmp.ge.f32.partialorder %v2204_v45, %v1375_v16  ;;  %vm666_vm15 = vcmp.lt.f32.partialorder %v2204_v45, %v1377_v18  ;;  %v872_v26 = vmul.f32 %v871_v37, %v803_v49  ;;  %vm658_vm0 = vmand %vm652_vm11, %vm657_vm13 }
 0x30c   :  { %v812_v25 = vadd.f32 %v811_v23, %v805_v10  ;;  %vm670_vm1 = vcmp.ge.f32.partialorder %v2204_v45, %v1377_v18  ;;  %vm675_vm2 = vcmp.lt.f32.partialorder %v2204_v45, %v1379_v21  ;;  %v2360_v31 = vsel %vm649_vm12, 1.0, %v2030_v1  ;;  %vm667_vm3 = vmand %vm661_vm14, %vm666_vm15  ;;  %v1026_v23 = vld [vmem:[#allocation12 + $0x328] sm:$0xff] }
 0x30d   :  { %v2357_v30 = vadd.f32 %v820_v60, %v814_v24  ;;  %v2364_v32 = vsub.f32 %v2204_v45, %v2278_v27  ;;  %v2367_v33 = vsub.f32 %v1375_v16, %v2204_v45  ;;  %v1376_v36 = vsel %vm658_vm0, 1.0, %v2030_v1  ;;  %vm2377_vm4 = vmand %vm670_vm1, %vm675_vm2 }
 0x30e   :  { %v881_v34 = vmul.f32 %v880_v7, %v812_v25  ;;  %v878_v35 = vmul.f32 %v877_v15, %v812_v25  ;;  %v760_v37 = vsub.f32 %v2204_v45, %v2329_v12  ;;  %v1378_v48 = vsel %vm667_vm3, 1.0, %v2030_v1  ;;  %v1399_v7 = vld [vmem:[%s2494_s9 + $0x12] ss:$0 sm:$0xff] }
 0x30f   :  { %v887_v41 = vmul.f32 %v886_v19, %v2357_v30  ;;  %v750_v49 = vmul.f32 %v2350_v28, %v2364_v32  ;;  %v757_v50 = vmul.f32 %v1388_v29, %v2367_v33  ;;  %v2393_v44 = vsub.f32 %v1377_v18, %v2204_v45 }
 0x310   :  { %v879_v51 = vadd.f32 %v878_v35, %v872_v26  ;;  %v761_v55 = vmul.f32 %v1388_v29, %v760_v37  ;;  %v771_v56 = vsub.f32 %v2204_v45, %v1375_v16  ;;  %v774_v53 = vsub.f32 %v1379_v21, %v2204_v45  ;;  %v1025_v21 = vld [vmem:[#allocation12 + $0x320] sm:$0xff]  ;;  %v2420_v29 = vld [vmem:[%s2494_s9 + $0x19] ss:$0 sm:$0xff]  ;;  %v1043_v35 = vld [vmem:[#allocation12 + $0x3b0] sm:$0xff] }
 0x311   :  { %v888_v59 = vadd.f32 %v887_v41, %v881_v34  ;;  %v751_v61 = vmul.f32 %v2360_v31, %v750_v49  ;;  %v758_v0 = vmul.f32 %v1376_v36, %v757_v50  ;;  %v1380_v6 = vsel %vm2377_vm4, 1.0, %v2030_v1 }
 0x312   :  { %v762_v9 = vmul.f32 %v1376_v36, %v761_v55  ;;  %v768_v10 = vmul.f32 %v1389_v42, %v2393_v44  ;;  %v772_v11 = vmul.f32 %v1389_v42, %v771_v56  ;;  %v779_v14 = vmul.f32 %v1390_v52, %v774_v53  ;;  %v1044_v36 = vld [vmem:[#allocation12 + $0x3b8] sm:$0xff]  ;;  %v1396_v56 = vld [vmem:[%s2494_s9 + $0xf] ss:$0 sm:$0xff] }
 0x313   :  { %1187 = vmatprep.mubr.f32.mxu1 %v888_v59  ;;  %v2405_v13 = vadd.f32 %v758_v0, %v751_v61  ;;  %v840_v15 = vmul.f32 %v2390_v54, %v2364_v32  ;;  %v1834_v19 = vpack.c.bf16 %v1024_v2, %v1023_v57  ;;  %v1836_v1 = vpack.c.bf16 %v1042_v4, %v1041_v3  ;;  %v1045_v0 = vld [vmem:[#allocation12 + $0x3c0] sm:$0xff]  ;;  %v1046_v2 = vld [vmem:[#allocation12 + $0x3c8] sm:$0xff] }
 0x314   :  { %1188 = vmatmul.mubr.f32.vlgmr.msra.gmra.mrb[8].mxu1 %v879_v51  ;;  %v769_v16 = vmul.f32 %v1378_v48, %v768_v10  ;;  %v773_v18 = vmul.f32 %v1378_v48, %v772_v11  ;;  %v780_v24 = vmul.f32 %v1380_v6, %v779_v14  ;;  %v846_v25 = vmul.f32 %v1398_v5, %v2393_v44  ;;  %v1407_v48 = vld [vmem:[%s2494_s9 + $0x1a] ss:$0 sm:$0xff]  ;;  %v1028_v51 = vld [vmem:[#allocation12 + $0x338] sm:$0xff] }
 0x315   :  { %1831 = vmatpush3.bf16.msra.mxu1 %v1830_v46  ;;  %v841_v60 = vmul.f32 %v840_v15, %v2405_v13  ;;  %v849_v26 = vmul.f32 %v1398_v5, %v760_v37  ;;  %v540_v38 = vsub.f32 0.0, %v2204_v45  ;;  %v2428_v39 = vsub.f32 %v2204_v45, %v2276_v22  ;;  %v1030_v10 = vld [vmem:[#allocation12 + $0x348] sm:$0xff]  ;;  %v1047_v15 = vld [vmem:[#allocation12 + $0x3d0] sm:$0xff] }
 0x316   :  { %v770_v34 = vadd.f32 %v769_v16, %v762_v9  ;;  %1833 = vmatprep.subr.bf16.mxu1 %v1832_v17  ;;  %v741_v46 = vsub.f32 %v2329_v12, %v2204_v45  ;;  %v781_v37 = vadd.f32 %v780_v24, %v773_v18  ;;  %v855_v41 = vmul.f32 %v1399_v7, %v774_v53  ;;  %v1027_v12 = vld [vmem:[#allocation12 + $0x330] sm:$0xff]  ;;  %v1048_v7 = vld [vmem:[#allocation12 + $0x3d8] sm:$0xff] }
 0x317   :  { %v1838_v42 = vpack.c.bf16 %v1026_v23, %v1025_v21  ;;  %v541_v17 = vmul.f32 1.442695, %v540_v38  ;;  %v739_v27 = vmul.f32 %v2294_v40, %v2428_v39  ;;  %v916_v22 = vmul.f32 %v2420_v29, %v2364_v32  ;;  %v1050_v21 = vld [vmem:[#allocation12 + $0x3e8] sm:$0xff] }
 0x318   :  { %v847_v62 = vmul.f32 %v846_v25, %v770_v34  ;;  %v850_v63 = vmul.f32 %v849_v26, %v770_v34  ;;  %v856_v49 = vmul.f32 %v855_v41, %v781_v37  ;;  %v1840_v50 = vpack.c.bf16 %v1044_v36, %v1043_v35  ;;  %v1033_v37 = vld [vmem:[#allocation12 + $0x360] sm:$0xff]  ;;  %v1034_v41 = vld [vmem:[#allocation12 + $0x368] sm:$0xff] }
 0x319   :  { %1835 = vmatpush3.bf16.msra.mxu1 %v1834_v19  ;;  %v746_v52 = vmul.f32 %v2350_v28, %v741_v46  ;;  %1875 = vpow2.f32 %v541_v17  ;;  %v740_v40 = vmul.f32 %v2311_v43, %v739_v27  ;;  %v822_v57 = vmul.f32 %v2318_v58, %v2302_v47  ;;  %v1404_v58 = vld [vmem:[%s2494_s9 + $0x17] ss:$0 sm:$0xff]  ;;  %v1035_v27 = vld [vmem:[#allocation12 + $0x370] sm:$0xff] }
 0x31a   :  { %v2440_v55 = vadd.f32 %v847_v62, %v841_v60  ;;  %1837 = vmatprep.subr.bf16.mxu1 %v1836_v1  ;;  %v857_v32 = vadd.f32 %v856_v49, %v850_v63  ;;  %v922_v59 = vmul.f32 %v1407_v48, %v774_v53  ;;  %v1842_v3 = vpack.c.bf16 %v1028_v51, %v1027_v12  ;;  %v1029_v53 = vld [vmem:[#allocation12 + $0x340] sm:$0xff]  ;;  %v1052_v48 = vld [vmem:[#allocation12 + $0x3f8] sm:$0xff]  ;;  %v1405_v62 = vld [vmem:[%s2494_s9 + $0x18] ss:$0 sm:$0xff]  ;;  %s2032_s9 = smov [#allocation13]  }
 0x31b   :  { %v747_v61 = vmul.f32 %v2360_v31, %v746_v52  ;;  %v823_v4 = vmul.f32 %v822_v57, %v2333_v8  ;;  %v828_v9 = vmul.f32 %v1396_v56, %v741_v46  ;;  %v890_v43 = vmul.f32 %v2335_v20, %v2357_v30  ;;  %v1031_v20 = vld [vmem:[#allocation12 + $0x350] sm:$0xff]  ;;  %v1032_v30 = vld [vmem:[#allocation12 + $0x358] sm:$0xff]  ;;  %v1049_v1 = vld [vmem:[#allocation12 + $0x3e0] sm:$0xff]  ;;  %s1340_s7 = sshll.u32 %s2032_s9, 4  ;;  %s1341_s7 = int_to_ptr.vmem [resolvable:$true] %s1340_s7 }
 0x31c   :  { %v917_v28 = vmul.f32 %v916_v22, %v2440_v55  ;;  %v923_v5 = vmul.f32 %v922_v59, %v857_v32  ;;  %v1844_v31 = vpack.c.bf16 %v1046_v2, %v1045_v0  ;;  %v895_v16 = vmul.f32 %v1404_v58, %v741_v46  ;;  %v1036_v49 = vld [vmem:[#allocation12 + $0x378] sm:$0xff]  ;;  %v989_v52 = vld [vmem:[#allocation12 + $0x200] sm:$0xff]  ;;  %s1989_s27 = scalar_lea.vmem %s1341_s7, 128  ;;  %p1994_p13 = scmp.lt.s32.totalorder %s1341_s7, %s1341_s7 }
 0x31d   :  { %1839 = vmatpush3.bf16.msra.mxu1 %v1838_v42  ;;  %v748_v6 = vadd.f32 %v747_v61, %v740_v40  ;;  %v1846_v18 = vpack.c.bf16 %v1030_v10, %v1029_v53  ;;  %v1848_v19 = vpack.c.bf16 %v1048_v7, %v1047_v15  ;;  %v831_v60 = vmul.f32 %v1396_v56, %v2428_v39  ;;  %v1051_v42 = vld [vmem:[#allocation12 + $0x3f0] sm:$0xff]  ;;  %v990_v56 = vld [vmem:[#allocation12 + $0x208] sm:$0xff]  ;;  %v1008_v0 = vld [vmem:[#allocation12 + $0x298] sm:$0xff]  ;;  %p1990_p12 = scmp.ne.s32.totalorder %s1341_s7, %s1989_s27  ;;  %p1995_p0 = scmp.lt.s32.totalorder %s1989_s27, %s1989_s27 }
 0x31e   :  { %1841 = vmatprep.subr.bf16.mxu1 %v1840_v50  ;;  %v924_v11 = vadd.f32 %v923_v5, %v917_v28  ;;  %v837_v25 = vmul.f32 %v2390_v54, %v2367_v33  ;;  %v1850_v34 = vpack.c.bf16 %v1032_v30, %v1031_v20  ;;  %v1852_v46 = vpack.c.bf16 %v1050_v21, %v1049_v1  ;;  %v1007_v61 = vld [vmem:[#allocation12 + $0x290] sm:$0xff]  ;;  %v1010_v5 = vld [vmem:[#allocation12 + $0x2a8] sm:$0xff]  ;;  %v1016_v20 = vld [vmem:[#allocation12 + $0x2d8] sm:$0xff] }
 0x31f   :  { %v829_v14 = vmul.f32 %v828_v9, %v748_v6  ;;  %v832_v36 = vmul.f32 %v831_v60, %v748_v6  ;;  %v1854_v54 = vpack.c.bf16 %v1034_v41, %v1033_v37  ;;  %v1856_v17 = vpack.c.bf16 %v1052_v48, %v1051_v42  ;;  %v993_v9 = vld [vmem:[#allocation12 + $0x220] sm:$0xff]  ;;  %v995_v10 = vld [vmem:[#allocation12 + $0x230] sm:$0xff]  ;;  %v1014_v15 = vld [vmem:[#allocation12 + $0x2c8] sm:$0xff]  ;;  %p1996_p1 = por %p1995_p0, %p1994_p13 }
 0x320   :  { %1327 = vmatprep.mubr.f32.mxu1 %v924_v11  ;;  %v838_v38 = vmul.f32 %v837_v25, %v2405_v13  ;;  %v913_v13 = vmul.f32 %v2420_v29, %v2393_v44  ;;  %v907_v22 = vmul.f32 %v1405_v62, %v2428_v39  ;;  %v898_v50 = vmul.f32 %v1404_v58, %v2302_v47  ;;  %v991_v39 = vld [vmem:[#allocation12 + $0x210] sm:$0xff]  ;;  %v996_v11 = vld [vmem:[#allocation12 + $0x238] sm:$0xff]  ;;  %v1018_v60 = vld [vmem:[#allocation12 + $0x2e8] sm:$0xff] }
 0x321   :  { %1843 = vmatpush3.bf16.msra.mxu1 %v1842_v3  ;;  %v830_v8 = vadd.f32 %v829_v14, %v823_v4  ;;  %v904_v12 = vmul.f32 %v1405_v62, %v2367_v33  ;;  %v1858_v51 = vpack.c.bf16 %v1036_v49, %v1035_v27  ;;  %v1798_v44 = vpack.c.bf16 %v990_v56, %v989_v52  ;;  %v992_v33 = vld [vmem:[#allocation12 + $0x218] sm:$0xff]  ;;  %v1009_v4 = vld [vmem:[#allocation12 + $0x2a0] sm:$0xff]  ;;  %v1011_v58 = vld [vmem:[#allocation12 + $0x2b0] sm:$0xff]  ;;  %p1997_p2 = pnand %p1996_p1, %p1990_p12 }
 0x322   :  { %1845 = vmatprep.subr.bf16.mxu1 %v1844_v31  ;;  %v839_v63 = vadd.f32 %v838_v38, %v832_v36  ;;  %v914_v57 = vmul.f32 %v913_v13, %v2440_v55  ;;  %v1800_v47 = vpack.c.bf16 %v1008_v0, %v1007_v61  ;;  %v1802_v55 = vpack.c.bf16 %v992_v33, %v991_v39  ;;  %v1012_v31 = vld [vmem:[#allocation12 + $0x2b8] sm:$0xff]  ;;  %v1013_v14 = vld [vmem:[#allocation12 + $0x2c0] sm:$0xff]  ;;  %v999_v21 = vld [vmem:[#allocation12 + $0x250] sm:$0xff] }
 0x323   :  { %v896_v23 = vmul.f32 %v895_v16, %v830_v8  ;;  %v1876_v24 = vpop.eup %1875  ;;  %v899_v32 = vmul.f32 %v898_v50, %v830_v8  ;;  %v1804_v6 = vpack.c.bf16 %v1010_v5, %v1009_v4  ;;  %v1808_v53 = vpack.c.bf16 %v1012_v31, %v1011_v58  ;;  %v997_v16 = vld [vmem:[#allocation12 + $0x240] sm:$0xff]  ;;  %v1002_v36 = vld [vmem:[#allocation12 + $0x268] sm:$0xff]  ;;  %v1019_v38 = vld [vmem:[#allocation12 + $0x2f0] sm:$0xff] }
 0x324   :  { %v543_v26 = vadd.f32 1.0, %v1876_v24  ;;  %v908_v40 = vmul.f32 %v907_v22, %v839_v63  ;;  %v905_v59 = vmul.f32 %v904_v12, %v839_v63  ;;  %v1810_v7 = vpack.c.bf16 %v996_v11, %v995_v10  ;;  %v1017_v24 = vld [vmem:[#allocation12 + $0x2e0] sm:$0xff]  ;;  %v1003_v42 = vld [vmem:[#allocation12 + $0x270] sm:$0xff]  ;;  %v1004_v48 = vld [vmem:[#allocation12 + $0x278] sm:$0xff] }
 0x325   :  { %1847 = vmatpush3.bf16.msra.mxu1 %v1846_v18  ;;  %v2459_v35 = vadd.f32 %v896_v23, %v890_v43  ;;  %v994_v43 = vld [vmem:[#allocation12 + $0x228] sm:$0xff]  ;;  %v1812_v8 = vpack.c.bf16 %v1014_v15, %v1013_v14  ;;  %v1000_v23 = vld [vmem:[#allocation12 + $0x258] sm:$0xff]  ;;  %v1826_v62 = vpack.c.bf16 %v1004_v48, %v1003_v42 }
 0x326   :  { %1849 = vmatprep.subr.bf16.mxu1 %v1848_v19  ;;  %1877 = vrcp.f32 %v543_v26  ;;  %v915_v28 = vadd.f32 %v914_v57, %v908_v40  ;;  %v906_v3 = vadd.f32 %v905_v59, %v899_v32  ;;  %v998_v18 = vld [vmem:[#allocation12 + $0x248] sm:$0xff]  ;;  %v1015_v19 = vld [vmem:[#allocation12 + $0x2d0] sm:$0xff]  ;;  %v1818_v25 = vpack.c.bf16 %v1000_v23, %v999_v21 }
 0x327   :  { %v1814_v30 = vpack.c.bf16 %v998_v18, %v997_v16  ;;  %v1816_v1 = vpack.c.bf16 %v1016_v20, %v1015_v19  ;;  %v1820_v26 = vpack.c.bf16 %v1018_v60, %v1017_v24 }
 0x329   :  { %1851 = vmatpush3.bf16.msra.mxu1 %v1850_v34  ;;  %v1001_v34 = vld [vmem:[#allocation12 + $0x260] sm:$0xff] }
 0x32a   :  { %1853 = vmatprep.subr.bf16.mxu1 %v1852_v46  ;;  %v1020_v46 = vld [vmem:[#allocation12 + $0x2f8] sm:$0xff]  ;;  %v1822_v37 = vpack.c.bf16 %v1002_v36, %v1001_v34 }
 0x32b   :  { %v1824_v41 = vpack.c.bf16 %v1020_v46, %v1019_v38 }
 0x32d   :  { %1855 = vmatpush3.bf16.msra.mxu1 %v1854_v54 }
 0x32e   :  { %1857 = vmatprep.subr.bf16.mxu1 %v1856_v17 }
 0x330   :  { %v1878_v2 = vpop.eup %1877 }
 0x331   :  { %1859 = vmatpush3.bf16.msra.mxu1 %v1858_v51  ;;  %v546_v29 = vmul.f32 %v1878_v2, %v2204_v45  ;;  %v1806_v45 = vpack.c.bf16 %v994_v43, %v993_v9 }
 0x333   :  { %1118 = vmatmul.mubr.f32.vlgmr.msra.gmra.mrb[8].mxu0 %v546_v29 }
 0x334   :  { %1328 = vmatmul.mubr.f32.vlgmr.msra.gmra.mrb[10].mxu1 %v915_v28  ;;  %1799 = vmatpush3.bf16.msra.mxu0 %v1798_v44 }
 0x335   :  { %1257 = vmatprep.mubr.f32.mxu0 %v906_v3  ;;  %1801 = vmatprep.subr.bf16.mxu0 %v1800_v47 }
 0x338   :  { %1803 = vmatpush3.bf16.msra.mxu0 %v1802_v55 }
 0x339   :  { %1805 = vmatprep.subr.bf16.mxu0 %v1804_v6 }
 0x33c   :  { %1807 = vmatpush3.bf16.msra.mxu0 %v1806_v45 }
 0x33d   :  { %1809 = vmatprep.subr.bf16.mxu0 %v1808_v53 }
 0x340   :  { %1811 = vmatpush3.bf16.msra.mxu0 %v1810_v7 }
 0x341   :  { %1813 = vmatprep.subr.bf16.mxu0 %v1812_v8 }
 0x344   :  { %1815 = vmatpush3.bf16.msra.mxu0 %v1814_v30 }
 0x345   :  { %1817 = vmatprep.subr.bf16.mxu0 %v1816_v1 }
 0x348   :  { %1819 = vmatpush3.bf16.msra.mxu0 %v1818_v25 }
 0x349   :  { %1821 = vmatprep.subr.bf16.mxu0 %v1820_v26 }
 0x34c   :  { %1823 = vmatpush3.bf16.msra.mxu0 %v1822_v37 }
 0x34d   :  { %1825 = vmatprep.subr.bf16.mxu0 %v1824_v41 }
 0x350   :  { %1827 = vmatpush3.bf16.msra.mxu0 %v1826_v62 }
 0x353   :  { %1258 = vmatmul.mubr.f32.vlgmr.msra.gmra.mrb[10].mxu0 %v2459_v35 }
 0x3e7   :  { %v1538_v54 = vpop.f32.mrb[8].mxu1 }
 0x3e8   :  { %v1539_v63 = vpop.f32.mrb[9].mxu1 }
 0x3e9   :  { %v1540_v17 = vadd.f32 %v1539_v63, %v1538_v54 }
 0x406   :  { %v1503_v27 = vpop.f32.mrb[8].mxu0 }
 0x407   :  { %v1608_v49 = vpop.f32.mrb[10].mxu1  ;;  %v1504_v13 = vpop.f32.mrb[9].mxu0 }
 0x408   :  { %v1609_v22 = vpop.f32.mrb[11].mxu1  ;;  %v1505_v50 = vadd.f32 %v1504_v13, %v1503_v27 }
 0x409   :  { %v1610_v12 = vadd.f32 %v1609_v22, %v1608_v49 }
 0x40a   :  { %v1190_v51 = vadd.f32 %v1540_v17, %v1505_v50 }
 0x426   :  { %v1573_v52 = vpop.f32.mrb[10].mxu0 }
 0x427   :  { %v1574_v56 = vpop.f32.mrb[11].mxu0 }
 0x428   :  { %v1575_v40 = vadd.f32 %v1574_v56, %v1573_v52 }
 0x42a   :  { %v1260_v57 = vadd.f32 %v1575_v40, %v1190_v51 }
 0x42c   :  { %v1330_v32 = vadd.f32 %v1610_v12, %v1260_v57 }
 0x42e   :  { %1333 = vst [vmem:[#allocation13] sm:$0xff] %v1330_v32 }
 0x42f   :  { %2000 = shalt.err (!%p1997_p2)
}
 0x430   :  { %s2001_s2 = scalar_lea.hbm %s2496_s11, 128 }
 0x431   :  { %p2002_p3 = scmp.ne.s32.totalorder %s2496_s11, %s2001_s2  ;;  %p2005_p4 = scmp.lt.u32.totalorder %s2001_s2, %s2496_s11 }
 0x433   :  { %p2007_p5 = pnand %p2005_p4, %p2002_p3 }
 0x435   :  { %2010 = shalt.err (!%p2007_p5)
}
 0x436   :  { %1343 = dma.vmem_to_hbm [thread:$0]  %s1341_s7, 128, %s2496_s11, [#allocation6]  }
 0x437   :  { %2017 = dma.done.wait [#allocation6], 128  }
 0x438   :  { %2018 = vsyncadd [#allocation6], 4294967168 }
 0x439   :  { %1347 = vsyncpa [#allocation5], 1 }
 0x43a   :  { %1348 = vsyncpa [#allocation8], 1 }
 0x43b   :  { %1349 = vsyncpa [#allocation11], 1 }
 0x43c   :  { %1350 = vsyncpa [#allocation6], 1 }

</bundles_post_ra>
